<compile_context>
chip_gen: v5e
topology: v5e:2x2
jax: 0.10.0
libtpu: 0.0.40
codegen_flags: <defaults>
</compile_context>

<pallas_src>
import functools
import math

import jax
import jax.numpy as jnp
from jax import lax
from jax.experimental import pallas as pl
from jax.experimental.pallas import tpu as pltpu


def _attention2d_kernel(x_ref, w_ref, o_ref, *, num_heads, d_head, c_in,
                        c_out, q_tile):
    """One batch element: channel-major (C_in, L) -> (C_out, L) MHA."""
    x = x_ref[0]                                         # (C_in, L) f32
    L = x.shape[-1]
    n_q = L // q_tile

    w = w_ref[...]                                       # packed parameter slab
    wqkv = w[:3 * c_out, :c_in]                          # (3*C_out, C_in)
    bqkv = w[:3 * c_out, c_in:c_in + 1]                  # (3*C_out, 1)
    wo = w[3 * c_out:, :c_out]                           # (C_out, C_out)
    bo = w[3 * c_out:, c_out:c_out + 1]                  # (C_out, 1)

    # Fused Q/K/V projection (lane dim = L, one MXU pass).
    qkv = jnp.dot(wqkv, x, preferred_element_type=jnp.float32) + bqkv

    scale = 1.0 / math.sqrt(d_head)
    q_all = qkv[:c_out] * scale                          # (C_out, L), pre-scaled
    k_all = qkv[c_out:2 * c_out]                         # (C_out, L)
    v_all = qkv[2 * c_out:].astype(jnp.bfloat16)         # bf16 for the MXU

    # TODO(synk): for H*W >> 256 switch to an online-softmax key-tile loop and
    # set vmem_limit_bytes explicitly (the (q_tile, L) tiles grow with L).
    for qi in range(n_q):                                # static query-tile loop
        q0 = qi * q_tile
        acc = jnp.zeros((c_out, q_tile), jnp.float32)
        for h in range(num_heads):                       # static, tiny head loop
            lo = h * d_head
            q_h = q_all[lo:lo + d_head, q0:q0 + q_tile]          # (d, TQ)
            k_h = k_all[lo:lo + d_head, :]                       # (d, L)
            v_h = v_all[lo:lo + d_head, :]                       # (d, L) bf16

            # Scores: contract the head dim (dim 0 of both) -> (TQ, L);
            # avoids materializing a lane-sparse transposed q.
            s = lax.dot_general(q_h, k_h, (((0,), (0,)), ((), ())),
                                preferred_element_type=jnp.float32)
            s = s - jnp.max(s, axis=-1, keepdims=True)
            p = jnp.exp(s)                                       # unnormalized
            denom = jnp.sum(p, axis=-1, keepdims=True)           # (TQ, 1)

            # Deferred normalization: contract over keys first, then scale the
            # small (d, TQ) result by the per-query reciprocal (EUP vrcp).
            o_h = lax.dot_general(v_h, p.astype(jnp.bfloat16),
                                  (((1,), (1,)), ((), ())),
                                  preferred_element_type=jnp.float32)  # (d, TQ)
            inv = pl.reciprocal(jnp.transpose(denom), approx=True)     # (1, TQ)
            o_h = o_h * inv

            # Accumulate straight through the output projection
            # (no lane-axis head concatenation).
            acc = acc + jnp.dot(wo[:, lo:lo + d_head], o_h,
                                preferred_element_type=jnp.float32)

        # Single unmasked, full-sublane, 128-lane-wide store per query tile.
        o_ref[0, :, q0:q0 + q_tile] = (acc + bo).astype(o_ref.dtype)


def attention2d(x_nchw, params, num_heads, *, q_tile=128):
    """Attention2d forward: shuffle_pattern 'NA', no coordinate grid."""
    wq, wk, wv, wo, bq, bk, bv, bo = params
    B, C_in, H, W = x_nchw.shape
    L = H * W
    C_out = wq.shape[0]
    assert C_out % num_heads == 0
    d_head = C_out // num_heads
    q_tile = min(q_tile, L)
    assert L % q_tile == 0

    # Channel-major flattening (free reshape, no transpose, x read once).
    x_cl = x_nchw.reshape(B, C_in, L).astype(jnp.float32)

    # Pack every grid-invariant parameter into one small slab:
    #   rows [0, 3*C_out)        : [ Wq;Wk;Wv | bq;bk;bv ]
    #   rows [3*C_out, 4*C_out)  : [ Wo       | bo       ]
    cols = max(C_in, C_out) + 1
    slab = jnp.zeros((4 * C_out, cols), jnp.float32)
    slab = slab.at[:3 * C_out, :C_in].set(jnp.concatenate([wq, wk, wv], axis=0))
    slab = slab.at[:3 * C_out, C_in].set(jnp.concatenate([bq, bk, bv], axis=0))
    slab = slab.at[3 * C_out:, :C_out].set(wo)
    slab = slab.at[3 * C_out:, C_out].set(bo)

    kernel = functools.partial(_attention2d_kernel, num_heads=num_heads,
                               d_head=d_head, c_in=C_in, c_out=C_out,
                               q_tile=q_tile)

    out_cl = pl.pallas_call(
        kernel,
        out_shape=jax.ShapeDtypeStruct((B, C_out, L), jnp.float32),
        grid_spec=pltpu.PrefetchScalarGridSpec(
            num_scalar_prefetch=0,
            grid=(B,),
            in_specs=[
                pl.BlockSpec((1, C_in, L), lambda b: (b, 0, 0)),
                pl.BlockSpec((4 * C_out, cols), lambda b: (0, 0)),
            ],
            out_specs=pl.BlockSpec((1, C_out, L), lambda b: (b, 0, 0)),
        ),
        compiler_params=pltpu.CompilerParams(
            dimension_semantics=("parallel",)),
    )(x_cl, slab)

    # Unflatten back to NCHW (free reshape, no transpose).
    return out_cl.reshape(B, C_out, H, W)


# ----------------------------------------------------------------------------
# Pure-JAX reference for the correctness check
# ----------------------------------------------------------------------------
def _reference(x_nchw, params, num_heads):
    wq, wk, wv, wo, bq, bk, bv, bo = params
    B, C_in, H, W = x_nchw.shape
    C_out = wq.shape[0]
    d = C_out // num_heads
    xt = jnp.transpose(x_nchw.reshape(B, C_in, H * W), (0, 2, 1))  # (B, L, C_in)
    q = xt @ wq.T + bq
    k = xt @ wk.T + bk
    v = xt @ wv.T + bv

    def split(t):
        return t.reshape(B, -1, num_heads, d).transpose(0, 2, 1, 3)

    qh, kh, vh = split(q), split(k), split(v)
    s = jnp.einsum('bhqd,bhkd->bhqk', qh, kh) / math.sqrt(d)
    p = jax.nn.softmax(s, axis=-1)
    o = jnp.einsum('bhqk,bhkd->bhqd', p, vh)
    o = o.transpose(0, 2, 1, 3).reshape(B, -1, C_out)
    o = o @ wo.T + bo
    return jnp.transpose(o, (0, 2, 1)).reshape(B, C_out, H, W)


if __name__ == "__main__":
    # Small shapes consistent with the module: in_channels=4, out_channels=8,
    # num_heads=2, 16x16 spatial, batch=2.
    B, C_in, H, W = 2, 4, 16, 16
    C_out, num_heads = 8, 2

    key = jax.random.PRNGKey(0)
    ks = jax.random.split(key, 9)
    x = jax.random.normal(ks[0], (B, C_in, H, W), dtype=jnp.float32)
    wq = jax.random.normal(ks[1], (C_out, C_in), jnp.float32) * 0.2
    wk = jax.random.normal(ks[2], (C_out, C_in), jnp.float32) * 0.2
    wv = jax.random.normal(ks[3], (C_out, C_in), jnp.float32) * 0.2
    wo = jax.random.normal(ks[4], (C_out, C_out), jnp.float32) * 0.2
    bq = jax.random.normal(ks[5], (C_out,), jnp.float32) * 0.05
    bk = jax.random.normal(ks[6], (C_out,), jnp.float32) * 0.05
    bv = jax.random.normal(ks[7], (C_out,), jnp.float32) * 0.05
    bo = jax.random.normal(ks[8], (C_out,), jnp.float32) * 0.05
    params = (wq, wk, wv, wo, bq, bk, bv, bo)

    out = attention2d(x, params, num_heads)
    out = jax.block_until_ready(out)

    ref = _reference(x, params, num_heads)
    assert out.shape == (B, C_out, H, W), out.shape
    max_err = float(jnp.max(jnp.abs(out - ref)))
    # bf16 p@v contraction + approx reciprocal -> relaxed (still tight) bound.
    assert max_err < 2e-2, max_err
    print("KERNEL_OK")
</pallas_src>

<mosaic_0001>
module attributes {stable_mosaic.version = 11 : i64} {
  func.func @_attention2d_kernel(%arg0: i32, %arg1: memref<1x4x256xf32, #tpu.memory_space<vmem>>, %arg2: memref<32x9xf32, #tpu.memory_space<vmem>>, %arg3: memref<1x8x256xf32, #tpu.memory_space<vmem>>) attributes {dimension_semantics = [#tpu.dimension_semantics<parallel>], iteration_bounds = array<i64: 2>, scalar_prefetch = 0 : i64, scratch_operands = 0 : i64, tpu.core_type = #tpu.core_type<tc>, window_params = [{transform_indices = @transform_0, window_bounds = array<i64: 1, 4, 256>}, {pipeline_mode = #tpu.pipeline_mode<synchronous>, transform_indices = @transform_1, window_bounds = array<i64: 32, 9>}, {transform_indices = @transform_2, window_bounds = array<i64: 1, 8, 256>}]} {
    %c0 = arith.constant 0 : index
    %c0_0 = arith.constant 0 : index
    %c0_1 = arith.constant 0 : index
    %0 = vector.load %arg1[%c0, %c0_0, %c0_1] : memref<1x4x256xf32, #tpu.memory_space<vmem>>, vector<1x4x256xf32>
    %1 = vector.shape_cast %0 : vector<1x4x256xf32> to vector<4x256xf32>
    %c0_2 = arith.constant 0 : index
    %c0_3 = arith.constant 0 : index
    %2 = vector.load %arg2[%c0_2, %c0_3] : memref<32x9xf32, #tpu.memory_space<vmem>>, vector<32x9xf32>
    %3 = vector.extract_strided_slice %2 {offsets = [0, 0], sizes = [24, 4], strides = [1, 1]} : vector<32x9xf32> to vector<24x4xf32>
    %4 = vector.extract_strided_slice %2 {offsets = [0, 4], sizes = [24, 1], strides = [1, 1]} : vector<32x9xf32> to vector<24x1xf32>
    %5 = vector.extract_strided_slice %2 {offsets = [24, 0], sizes = [8, 8], strides = [1, 1]} : vector<32x9xf32> to vector<8x8xf32>
    %6 = vector.extract_strided_slice %2 {offsets = [24, 8], sizes = [8, 1], strides = [1, 1]} : vector<32x9xf32> to vector<8x1xf32>
    %cst = arith.constant dense<0.000000e+00> : vector<24x256xf32>
    %7 = tpu.matmul %3, %1, %cst {dimension_numbers = #tpu.dot_dimension_numbers<[1], [0], [0], [1], [0, 0, 1, 1], [], []>} : vector<24x4xf32>, vector<4x256xf32>, vector<24x256xf32> -> vector<24x256xf32>
    %8 = vector.broadcast %4 : vector<24x1xf32> to vector<24x256xf32>
    %9 = arith.addf %7, %8 : vector<24x256xf32>
    %10 = vector.extract_strided_slice %9 {offsets = [0, 0], sizes = [8, 256], strides = [1, 1]} : vector<24x256xf32> to vector<8x256xf32>
    %cst_4 = arith.constant 5.000000e-01 : f32
    %11 = vector.broadcast %cst_4 : f32 to vector<8x256xf32>
    %12 = arith.mulf %10, %11 : vector<8x256xf32>
    %13 = vector.extract_strided_slice %9 {offsets = [8, 0], sizes = [8, 256], strides = [1, 1]} : vector<24x256xf32> to vector<8x256xf32>
    %14 = vector.extract_strided_slice %9 {offsets = [16, 0], sizes = [8, 256], strides = [1, 1]} : vector<24x256xf32> to vector<8x256xf32>
    %15 = arith.truncf %14 : vector<8x256xf32> to vector<8x256xbf16>
    %cst_5 = arith.constant 0.000000e+00 : f32
    %16 = vector.broadcast %cst_5 : f32 to vector<8x128xf32>
    %17 = vector.extract_strided_slice %12 {offsets = [0, 0], sizes = [4, 128], strides = [1, 1]} : vector<8x256xf32> to vector<4x128xf32>
    %18 = vector.extract_strided_slice %13 {offsets = [0, 0], sizes = [4, 256], strides = [1, 1]} : vector<8x256xf32> to vector<4x256xf32>
    %19 = vector.extract_strided_slice %15 {offsets = [0, 0], sizes = [4, 256], strides = [1, 1]} : vector<8x256xbf16> to vector<4x256xbf16>
    %cst_6 = arith.constant dense<0.000000e+00> : vector<128x256xf32>
    %20 = tpu.matmul %17, %18, %cst_6 {dimension_numbers = #tpu.dot_dimension_numbers<[0], [0], [1], [1], [0, 1, 1, 1], [], []>} : vector<4x128xf32>, vector<4x256xf32>, vector<128x256xf32> -> vector<128x256xf32>
    %cst_7 = arith.constant dense<0xFF800000> : vector<128xf32>
    %21 = vector.multi_reduction <maximumf>, %20, %cst_7 [1] : vector<128x256xf32> to vector<128xf32>
    %22 = vector.shape_cast %21 : vector<128xf32> to vector<128x1xf32>
    %23 = vector.broadcast %22 : vector<128x1xf32> to vector<128x256xf32>
    %24 = arith.subf %20, %23 : vector<128x256xf32>
    %25 = math.exp %24 : vector<128x256xf32>
    %cst_8 = arith.constant dense<0.000000e+00> : vector<128xf32>
    %26 = vector.multi_reduction <add>, %25, %cst_8 [1] : vector<128x256xf32> to vector<128xf32>
    %27 = vector.shape_cast %26 : vector<128xf32> to vector<128x1xf32>
    %28 = arith.truncf %25 : vector<128x256xf32> to vector<128x256xbf16>
    %cst_9 = arith.constant dense<0.000000e+00> : vector<4x128xf32>
    %29 = tpu.matmul %19, %28, %cst_9 {dimension_numbers = #tpu.dot_dimension_numbers<[1], [1], [0], [0], [0, 0, 1, 0], [], []>} : vector<4x256xbf16>, vector<128x256xbf16>, vector<4x128xf32> -> vector<4x128xf32>
    %30 = tpu.transpose %27, [1, 0] : vector<128x1xf32> -> vector<1x128xf32>
    %31 = tpu.reciprocal %30 {approx = true} : vector<1x128xf32> -> vector<1x128xf32>
    %32 = vector.broadcast %31 : vector<1x128xf32> to vector<4x128xf32>
    %33 = arith.mulf %29, %32 : vector<4x128xf32>
    %34 = vector.extract_strided_slice %5 {offsets = [0, 0], sizes = [8, 4], strides = [1, 1]} : vector<8x8xf32> to vector<8x4xf32>
    %cst_10 = arith.constant dense<0.000000e+00> : vector<8x128xf32>
    %35 = tpu.matmul %34, %33, %cst_10 {dimension_numbers = #tpu.dot_dimension_numbers<[1], [0], [0], [1], [0, 0, 1, 1], [], []>} : vector<8x4xf32>, vector<4x128xf32>, vector<8x128xf32> -> vector<8x128xf32>
    %36 = arith.addf %16, %35 : vector<8x128xf32>
    %37 = vector.extract_strided_slice %12 {offsets = [4, 0], sizes = [4, 128], strides = [1, 1]} : vector<8x256xf32> to vector<4x128xf32>
    %38 = vector.extract_strided_slice %13 {offsets = [4, 0], sizes = [4, 256], strides = [1, 1]} : vector<8x256xf32> to vector<4x256xf32>
    %39 = vector.extract_strided_slice %15 {offsets = [4, 0], sizes = [4, 256], strides = [1, 1]} : vector<8x256xbf16> to vector<4x256xbf16>
    %cst_11 = arith.constant dense<0.000000e+00> : vector<128x256xf32>
    %40 = tpu.matmul %37, %38, %cst_11 {dimension_numbers = #tpu.dot_dimension_numbers<[0], [0], [1], [1], [0, 1, 1, 1], [], []>} : vector<4x128xf32>, vector<4x256xf32>, vector<128x256xf32> -> vector<128x256xf32>
    %cst_12 = arith.constant dense<0xFF800000> : vector<128xf32>
    %41 = vector.multi_reduction <maximumf>, %40, %cst_12 [1] : vector<128x256xf32> to vector<128xf32>
    %42 = vector.shape_cast %41 : vector<128xf32> to vector<128x1xf32>
    %43 = vector.broadcast %42 : vector<128x1xf32> to vector<128x256xf32>
    %44 = arith.subf %40, %43 : vector<128x256xf32>
    %45 = math.exp %44 : vector<128x256xf32>
    %cst_13 = arith.constant dense<0.000000e+00> : vector<128xf32>
    %46 = vector.multi_reduction <add>, %45, %cst_13 [1] : vector<128x256xf32> to vector<128xf32>
    %47 = vector.shape_cast %46 : vector<128xf32> to vector<128x1xf32>
    %48 = arith.truncf %45 : vector<128x256xf32> to vector<128x256xbf16>
    %cst_14 = arith.constant dense<0.000000e+00> : vector<4x128xf32>
    %49 = tpu.matmul %39, %48, %cst_14 {dimension_numbers = #tpu.dot_dimension_numbers<[1], [1], [0], [0], [0, 0, 1, 0], [], []>} : vector<4x256xbf16>, vector<128x256xbf16>, vector<4x128xf32> -> vector<4x128xf32>
    %50 = tpu.transpose %47, [1, 0] : vector<128x1xf32> -> vector<1x128xf32>
    %51 = tpu.reciprocal %50 {approx = true} : vector<1x128xf32> -> vector<1x128xf32>
    %52 = vector.broadcast %51 : vector<1x128xf32> to vector<4x128xf32>
    %53 = arith.mulf %49, %52 : vector<4x128xf32>
    %54 = vector.extract_strided_slice %5 {offsets = [0, 4], sizes = [8, 4], strides = [1, 1]} : vector<8x8xf32> to vector<8x4xf32>
    %cst_15 = arith.constant dense<0.000000e+00> : vector<8x128xf32>
    %55 = tpu.matmul %54, %53, %cst_15 {dimension_numbers = #tpu.dot_dimension_numbers<[1], [0], [0], [1], [0, 0, 1, 1], [], []>} : vector<8x4xf32>, vector<4x128xf32>, vector<8x128xf32> -> vector<8x128xf32>
    %56 = arith.addf %36, %55 : vector<8x128xf32>
    %57 = vector.broadcast %6 : vector<8x1xf32> to vector<8x128xf32>
    %58 = arith.addf %56, %57 : vector<8x128xf32>
    %c0_16 = arith.constant 0 : index
    %c0_17 = arith.constant 0 : index
    %c0_18 = arith.constant 0 : index
    %59 = vector.load %arg3[%c0_16, %c0_17, %c0_18] : memref<1x8x256xf32, #tpu.memory_space<vmem>>, vector<1x8x128xf32>
    %60 = vector.shape_cast %59 : vector<1x8x128xf32> to vector<8x128xf32>
    %61 = vector.shape_cast %58 : vector<8x128xf32> to vector<1x8x128xf32>
    tpu.vector_store %arg3[%c0_16, %c0_17, %c0_18], %61 {strides = array<i32>} : memref<1x8x256xf32, #tpu.memory_space<vmem>>, vector<1x8x128xf32>,
    %cst_19 = arith.constant 0.000000e+00 : f32
    %62 = vector.broadcast %cst_19 : f32 to vector<8x128xf32>
    %63 = vector.extract_strided_slice %12 {offsets = [0, 128], sizes = [4, 128], strides = [1, 1]} : vector<8x256xf32> to vector<4x128xf32>
    %64 = vector.extract_strided_slice %13 {offsets = [0, 0], sizes = [4, 256], strides = [1, 1]} : vector<8x256xf32> to vector<4x256xf32>
    %65 = vector.extract_strided_slice %15 {offsets = [0, 0], sizes = [4, 256], strides = [1, 1]} : vector<8x256xbf16> to vector<4x256xbf16>
    %cst_20 = arith.constant dense<0.000000e+00> : vector<128x256xf32>
    %66 = tpu.matmul %63, %64, %cst_20 {dimension_numbers = #tpu.dot_dimension_numbers<[0], [0], [1], [1], [0, 1, 1, 1], [], []>} : vector<4x128xf32>, vector<4x256xf32>, vector<128x256xf32> -> vector<128x256xf32>
    %cst_21 = arith.constant dense<0xFF800000> : vector<128xf32>
    %67 = vector.multi_reduction <maximumf>, %66, %cst_21 [1] : vector<128x256xf32> to vector<128xf32>
    %68 = vector.shape_cast %67 : vector<128xf32> to vector<128x1xf32>
    %69 = vector.broadcast %68 : vector<128x1xf32> to vector<128x256xf32>
    %70 = arith.subf %66, %69 : vector<128x256xf32>
    %71 = math.exp %70 : vector<128x256xf32>
    %cst_22 = arith.constant dense<0.000000e+00> : vector<128xf32>
    %72 = vector.multi_reduction <add>, %71, %cst_22 [1] : vector<128x256xf32> to vector<128xf32>
    %73 = vector.shape_cast %72 : vector<128xf32> to vector<128x1xf32>
    %74 = arith.truncf %71 : vector<128x256xf32> to vector<128x256xbf16>
    %cst_23 = arith.constant dense<0.000000e+00> : vector<4x128xf32>
    %75 = tpu.matmul %65, %74, %cst_23 {dimension_numbers = #tpu.dot_dimension_numbers<[1], [1], [0], [0], [0, 0, 1, 0], [], []>} : vector<4x256xbf16>, vector<128x256xbf16>, vector<4x128xf32> -> vector<4x128xf32>
    %76 = tpu.transpose %73, [1, 0] : vector<128x1xf32> -> vector<1x128xf32>
    %77 = tpu.reciprocal %76 {approx = true} : vector<1x128xf32> -> vector<1x128xf32>
    %78 = vector.broadcast %77 : vector<1x128xf32> to vector<4x128xf32>
    %79 = arith.mulf %75, %78 : vector<4x128xf32>
    %80 = vector.extract_strided_slice %5 {offsets = [0, 0], sizes = [8, 4], strides = [1, 1]} : vector<8x8xf32> to vector<8x4xf32>
    %cst_24 = arith.constant dense<0.000000e+00> : vector<8x128xf32>
    %81 = tpu.matmul %80, %79, %cst_24 {dimension_numbers = #tpu.dot_dimension_numbers<[1], [0], [0], [1], [0, 0, 1, 1], [], []>} : vector<8x4xf32>, vector<4x128xf32>, vector<8x128xf32> -> vector<8x128xf32>
    %82 = arith.addf %62, %81 : vector<8x128xf32>
    %83 = vector.extract_strided_slice %12 {offsets = [4, 128], sizes = [4, 128], strides = [1, 1]} : vector<8x256xf32> to vector<4x128xf32>
    %84 = vector.extract_strided_slice %13 {offsets = [4, 0], sizes = [4, 256], strides = [1, 1]} : vector<8x256xf32> to vector<4x256xf32>
    %85 = vector.extract_strided_slice %15 {offsets = [4, 0], sizes = [4, 256], strides = [1, 1]} : vector<8x256xbf16> to vector<4x256xbf16>
    %cst_25 = arith.constant dense<0.000000e+00> : vector<128x256xf32>
    %86 = tpu.matmul %83, %84, %cst_25 {dimension_numbers = #tpu.dot_dimension_numbers<[0], [0], [1], [1], [0, 1, 1, 1], [], []>} : vector<4x128xf32>, vector<4x256xf32>, vector<128x256xf32> -> vector<128x256xf32>
    %cst_26 = arith.constant dense<0xFF800000> : vector<128xf32>
    %87 = vector.multi_reduction <maximumf>, %86, %cst_26 [1] : vector<128x256xf32> to vector<128xf32>
    %88 = vector.shape_cast %87 : vector<128xf32> to vector<128x1xf32>
    %89 = vector.broadcast %88 : vector<128x1xf32> to vector<128x256xf32>
    %90 = arith.subf %86, %89 : vector<128x256xf32>
    %91 = math.exp %90 : vector<128x256xf32>
    %cst_27 = arith.constant dense<0.000000e+00> : vector<128xf32>
    %92 = vector.multi_reduction <add>, %91, %cst_27 [1] : vector<128x256xf32> to vector<128xf32>
    %93 = vector.shape_cast %92 : vector<128xf32> to vector<128x1xf32>
    %94 = arith.truncf %91 : vector<128x256xf32> to vector<128x256xbf16>
    %cst_28 = arith.constant dense<0.000000e+00> : vector<4x128xf32>
    %95 = tpu.matmul %85, %94, %cst_28 {dimension_numbers = #tpu.dot_dimension_numbers<[1], [1], [0], [0], [0, 0, 1, 0], [], []>} : vector<4x256xbf16>, vector<128x256xbf16>, vector<4x128xf32> -> vector<4x128xf32>
    %96 = tpu.transpose %93, [1, 0] : vector<128x1xf32> -> vector<1x128xf32>
    %97 = tpu.reciprocal %96 {approx = true} : vector<1x128xf32> -> vector<1x128xf32>
    %98 = vector.broadcast %97 : vector<1x128xf32> to vector<4x128xf32>
    %99 = arith.mulf %95, %98 : vector<4x128xf32>
    %100 = vector.extract_strided_slice %5 {offsets = [0, 4], sizes = [8, 4], strides = [1, 1]} : vector<8x8xf32> to vector<8x4xf32>
    %cst_29 = arith.constant dense<0.000000e+00> : vector<8x128xf32>
    %101 = tpu.matmul %100, %99, %cst_29 {dimension_numbers = #tpu.dot_dimension_numbers<[1], [0], [0], [1], [0, 0, 1, 1], [], []>} : vector<8x4xf32>, vector<4x128xf32>, vector<8x128xf32> -> vector<8x128xf32>
    %102 = arith.addf %82, %101 : vector<8x128xf32>
    %103 = vector.broadcast %6 : vector<8x1xf32> to vector<8x128xf32>
    %104 = arith.addf %102, %103 : vector<8x128xf32>
    %c0_30 = arith.constant 0 : index
    %c0_31 = arith.constant 0 : index
    %c128 = arith.constant 128 : index
    %105 = vector.load %arg3[%c0_30, %c0_31, %c128] : memref<1x8x256xf32, #tpu.memory_space<vmem>>, vector<1x8x128xf32>
    %106 = vector.shape_cast %105 : vector<1x8x128xf32> to vector<8x128xf32>
    %107 = vector.shape_cast %104 : vector<8x128xf32> to vector<1x8x128xf32>
    tpu.vector_store %arg3[%c0_30, %c0_31, %c128], %107 {strides = array<i32>} : memref<1x8x256xf32, #tpu.memory_space<vmem>>, vector<1x8x128xf32>,
    return
  }
  func.func @transform_0(%arg0: i32) -> (i32, i32, i32) {
    %c0_i32 = arith.constant 0 : i32
    %c0_i32_0 = arith.constant 0 : i32
    %c0_i32_1 = arith.constant 0 : i32
    return %arg0, %c0_i32, %c0_i32_0 : i32, i32, i32
  }
  func.func @transform_1(%arg0: i32) -> (i32, i32) {
    %c0_i32 = arith.constant 0 : i32
    %c0_i32_0 = arith.constant 0 : i32
    %c0_i32_1 = arith.constant 0 : i32
    return %c0_i32, %c0_i32_0 : i32, i32
  }
  func.func @transform_2(%arg0: i32) -> (i32, i32, i32) {
    %c0_i32 = arith.constant 0 : i32
    %c0_i32_0 = arith.constant 0 : i32
    %c0_i32_1 = arith.constant 0 : i32
    return %arg0, %c0_i32, %c0_i32_0 : i32, i32, i32
  }
}

</mosaic_0001>

<bundles_post_ra>
// kernel: tpu_custom_call.1
= control target key start
LH: loop header
LB: loop body
LE: loop exit
PB: predicated region body
PF: predicated region fallthrough
CT: control target
= control target key end

     0   :  { %7 = vsyncpa [#allocation3], 0  ;;  %s4087_s0 = inlined_call_operand.vmem [shape: f32[2,4,256], index: 0, kind: input, shape index: {}]   ;;  %s4088_s1 = inlined_call_operand.vmem [shape: f32[32,9], index: 1, kind: input, shape index: {}]   ;;  %s4089_s2 = inlined_call_operand.hbm [shape: f32[2,8,256], index: 2, kind: output, shape index: {}]  }
   0x1   :  { %9 = vsyncpa [#allocation3 + $0x1], 0  ;;  %s2920_s9 = smov 0   ;;  %s2922_s10 = smov 0  }
   0x2   :  { %s2924_s11 = smov 0   ;;  %s2926_s12 = smov 0  }
   0x3 LB: > { %s2941_s13 = sadd.s32 4294967295, %s2900_s12   ;;  %s2361_s14 = sadd.s32 4294967294, %s2900_s12   ;;  %s2900_s12 = sphi %s2926_s12, %s4131_s12   ;;  %s2896_s11 = sphi %s2924_s11, %s4130_s11   ;;  %s2892_s10 = sphi %s2922_s10, %s4129_s10   ;;  %s2888_s9 = sphi %s2920_s9, %s4128_s9  }
   0x4   : > { %s2945_s15 = sadd.s32 1, %s2900_s12   ;;  %s69_s16 = sadd.s32 1, %s2896_s11 }
   0x5   : > { %s66_s17 = ssub.s32 %s2900_s12, %s2945_s15  ;;  %p79_p0 = scmp.ne.s32.totalorder %s2896_s11, %s2892_s10 }
   0x6   : > { %p67_p1 = scmp.eq.s32.totalorder %s66_s17, 0  ;;  %p80_p2 = scmp.eq.s32.totalorder %s2941_s13, 1 }
   0x7   : > { %p85_p3 = scmp.ne.s32.totalorder %s2892_s10, %s2888_s9  ;;  %p86_p4 = scmp.eq.s32.totalorder %s2361_s14, 1 }
   0x8   : > { %s2956_s18 = scalar_select %p67_p1, %s2896_s11, %s69_s16  }
   0x9   : > { %p2958_p5 = por %p80_p2, %p79_p0  ;;  %p2962_p6 = por %p86_p4, %p85_p3 }
   0xa   : > { %p2364_p7 = scmp.ge.s32.totalorder %s2900_s12, 1  ;;  %p115_p8 = scmp.lt.s32.totalorder %s2900_s12, 3 }
   0xc   : > { %p116_p9 = pnand %p2364_p7, %p115_p8 }
   0xe   : > { %119 = sbr.rel (%p116_p9) target bundleno = 2918 (0xb66), region = 28 }
  0x13   : > { %p137_p10 = scmp.lt.s32.totalorder %s2941_s13, 1  ;;  %v143_v0 = vld [vmem:[%s4088_s1] sm:$0xff]  ;;  %v2902_v1 = vmov 4   ;;  %v144_v3 = vld [vmem:[%s4088_s1 + $0x8] sm:$0xff]  ;;  %vm173_vm0 = vcmask 1043456   ;;  %vm166_vm1 = vcmask 31744  }
  0x14   : > { %2570 = vset.pattern.permute.xlu0 %v2902_v1  ;;  %v2988_v6 = vld [vmem:[%s4088_s1 + $0x10] sm:$0xff]  ;;  %s2903_s6 = smov 124   ;;  %s134_s14 = sand.u32 1, %s2892_s10  }
  0x15   : > { %s138_s23 = scalar_select %p137_p10, %s2941_s13, 1  ;;  %149 = vperm.xlu0 %2570, %v143_v0  }
  0x16   : > { %s2365_s16 = sshll.u32 %s134_s14, 4  ;;  %s2526_s21 = sshll.u32 %s2941_s13, 4 }
  0x17   : > { %s2525_s24 = sshll.u32 %s138_s23, 3  ;;  %s3905_s17 = scalar_lea.vmem [#allocation2], %s2365_s16 }
  0x18   : > { %s141_s27 = scalar_lea.vmem %s4087_s0, %s2525_s24  ;;  %s2297_s24 = scalar_lea.hbm %s4089_s2, %s2526_s21 }
  0x19   : > { %v142_v2 = vld [vmem:[%s141_s27] sm:$0xff]  ;;  %s2299_s25 = sshll.u32 %s3905_s17, 4  ;;  %s2301_s26 = sshll.u32 %s2297_s24, 4  ;;  %s2300_s25 = int_to_ptr.vmem [resolvable:$true] %s2299_s25  ;;  %s2302_s26 = int_to_ptr.hbm [resolvable:$true] %s2301_s26 }
  0x1a   : > { %163 = vst [vmem:[#allocation1] ss:$2 sm:$0xff] %v142_v2  ;;  %s2286_s27 = scalar_lea.sflag [#allocation3], %s134_s14  ;;  %s2852_s28 = sshra.s32 %s2302_s26, 4  ;;  %s2853_s28 = int_to_ptr.hbm [resolvable:$true] %s2852_s28 }
  0x1b   : > { %s2854_s13 = scalar_lea.hbm %s2853_s28, 16  ;;  %s2858_s3 = scalar_lea.hbm %s4089_s2, 32 }
  0x1c   : > { %p2855_p11 = scmp.ne.s32.totalorder %s2853_s28, %s2854_s13  ;;  %p2859_p0 = scmp.lt.s32.totalorder %s2853_s28, %s4089_s2 }
  0x1d   : > { %154 = vperm.xlu0 %2570, %v144_v3   ;;  %p2860_p1 = scmp.lt.s32.totalorder %s2858_s3, %s2854_s13 }
  0x1e   : > { %p2856_p12 = pnand %p2855_p11, %p2958_p5 }
  0x1f   : > { %p2861_p2 = por %p2860_p1, %p2859_p0 }
  0x20   : > { %p2857_p13 = pneg %p2856_p12 }
  0x21   : > { %v164_v4 = vld.sshfl [vmem:[#allocation1] sm:$0xff pattern:$0x75316420]  ;;  %v165_v5 = vld.sshfl [vmem:[#allocation1 + $0x8] sm:$0xff pattern:$0x75316420] }
  0x22   : > { %2368 = vmatpush.msk.msra.mxu2 %vm173_vm0, %v164_v4  ;;  %2372 = vmatpush.msk.msra.mxu3 %vm173_vm0, %v165_v5  ;;  %p2862_p3 = pnand %p2861_p2, %p2857_p13 }
  0x23   : > { %2369 = vmatmul.msk.f32.vlgmr.msra.gmra.mxu2 %vm166_vm1, %v143_v0  ;;  %2373 = vmatmul.msk.f32.vlgmr.msra.gmra.mxu3 %vm166_vm1, %v143_v0 }
  0x2b   : > { %2370 = vmatmul.msk.f32.gmra.mxu2 %vm166_vm1, %v144_v3  ;;  %2374 = vmatmul.msk.f32.gmra.mxu3 %vm166_vm1, %v144_v3 }
  0x33   : > { %2371 = vmatmul.msk.f32.gmra.mxu2 %vm166_vm1, %v2988_v6  ;;  %2375 = vmatmul.msk.f32.gmra.mxu3 %vm166_vm1, %v2988_v6 }
  0x87   : > { %v2994_v7 = vpop.permute.xlu0 %149 }
  0x8f   : > { %v155_v12 = vpop.permute.xlu0 %154 }
  0xa6   : > { %v195_v8 = vpop.f32.mrf.mxu2  ;;  %v2996_v9 = vpop.f32.mrf.mxu3 }
  0xa7   : > { %v196_v10 = vadd.f32 %v195_v8, %v2994_v7 }
  0xa9   : > { %v2999_v11 = vmul.f32 0.5, %v196_v10 }
  0xab   : > { %233 = vxpose.xlu1.b32.start.end [1/1] (short) %v2999_v11, 128 }
  0xae   : > { %v198_v13 = vpop.f32.mrf.mxu2  ;;  %v224_v14 = vpop.f32.mrf.mxu3 }
  0xaf   : > { %v3002_v15 = vadd.f32 %v198_v13, %v155_v12  ;;  %v3004_v16 = vadd.f32 %v224_v14, %v155_v12 }
  0xb1   : > { %4105 = vst [vmem:[#allocation5_spill] sm:$0xff] %v3002_v15  ;;  %2376 = vmatpush.msk.msrb.mxu2 %vm173_vm0, %v3002_v15  ;;  %2393 = vmatpush.msk.msrb.mxu3 %vm173_vm0, %v3004_v16 }
  0xb2   : > { %4106 = vst [vmem:[#allocation6_spill] sm:$0xff] %v3004_v16 }
  0xb6   : > { %v3042_v33 = vpop.f32.mrf.mxu2  ;;  %v3044_v34 = vpop.f32.mrf.mxu3 }
 0x14f   : > { %v249_v17 = vpop.trf.xlu1 }
 0x150   : > { %2377 = vmatmul.msk.f32.vlgmr.msrb.gmra.mxu2 %vm166_vm1, %v249_v17  ;;  %2394 = vmatmul.msk.f32.vlgmr.msrb.gmra.mxu3 %vm166_vm1, %v249_v17 }
 0x157   : > { %v250_v18 = vpop.trf.xlu1 }
 0x158   : > { %2378 = vmatmul.msk.f32.gmra.mxu2 %vm166_vm1, %v250_v18  ;;  %2395 = vmatmul.msk.f32.gmra.mxu3 %vm166_vm1, %v250_v18 }
 0x15f   : > { %v251_v19 = vpop.trf.xlu1 }
 0x160   : > { %2379 = vmatmul.msk.f32.gmra.mxu2 %vm166_vm1, %v251_v19  ;;  %2396 = vmatmul.msk.f32.gmra.mxu3 %vm166_vm1, %v251_v19 }
 0x167   : > { %v252_v20 = vpop.trf.xlu1 }
 0x168   : > { %2380 = vmatmul.msk.f32.gmra.mxu2 %vm166_vm1, %v252_v20  ;;  %2397 = vmatmul.msk.f32.gmra.mxu3 %vm166_vm1, %v252_v20 }
 0x16f   : > { %v253_v21 = vpop.trf.xlu1 }
 0x170   : > { %2381 = vmatmul.msk.f32.gmra.mxu2 %vm166_vm1, %v253_v21  ;;  %2398 = vmatmul.msk.f32.gmra.mxu3 %vm166_vm1, %v253_v21 }
 0x177   : > { %v254_v22 = vpop.trf.xlu1 }
 0x178   : > { %2382 = vmatmul.msk.f32.gmra.mxu2 %vm166_vm1, %v254_v22  ;;  %2399 = vmatmul.msk.f32.gmra.mxu3 %vm166_vm1, %v254_v22 }
 0x17f   : > { %v255_v23 = vpop.trf.xlu1 }
 0x180   : > { %2383 = vmatmul.msk.f32.gmra.mxu2 %vm166_vm1, %v255_v23  ;;  %2400 = vmatmul.msk.f32.gmra.mxu3 %vm166_vm1, %v255_v23 }
 0x187   : > { %v256_v24 = vpop.trf.xlu1 }
 0x188   : > { %2384 = vmatmul.msk.f32.gmra.mxu2 %vm166_vm1, %v256_v24  ;;  %2401 = vmatmul.msk.f32.gmra.mxu3 %vm166_vm1, %v256_v24 }
 0x18f   : > { %v257_v25 = vpop.trf.xlu1 }
 0x190   : > { %2385 = vmatmul.msk.f32.gmra.mxu2 %vm166_vm1, %v257_v25  ;;  %2402 = vmatmul.msk.f32.gmra.mxu3 %vm166_vm1, %v257_v25 }
 0x197   : > { %v258_v26 = vpop.trf.xlu1 }
 0x198   : > { %2386 = vmatmul.msk.f32.gmra.mxu2 %vm166_vm1, %v258_v26  ;;  %2403 = vmatmul.msk.f32.gmra.mxu3 %vm166_vm1, %v258_v26 }
 0x19f   : > { %v259_v27 = vpop.trf.xlu1 }
 0x1a0   : > { %2387 = vmatmul.msk.f32.gmra.mxu2 %vm166_vm1, %v259_v27  ;;  %2404 = vmatmul.msk.f32.gmra.mxu3 %vm166_vm1, %v259_v27 }
 0x1a7   : > { %v260_v28 = vpop.trf.xlu1 }
 0x1a8   : > { %2388 = vmatmul.msk.f32.gmra.mxu2 %vm166_vm1, %v260_v28  ;;  %2405 = vmatmul.msk.f32.gmra.mxu3 %vm166_vm1, %v260_v28 }
 0x1af   : > { %v261_v29 = vpop.trf.xlu1 }
 0x1b0   : > { %2389 = vmatmul.msk.f32.gmra.mxu2 %vm166_vm1, %v261_v29  ;;  %2406 = vmatmul.msk.f32.gmra.mxu3 %vm166_vm1, %v261_v29  ;;  %v726_v29 = vrot.slane %v2999_v11, 4 }
 0x1b7   : > { %v262_v30 = vpop.trf.xlu1 }
 0x1b8   : > { %2390 = vmatmul.msk.f32.gmra.mxu2 %vm166_vm1, %v262_v30  ;;  %2407 = vmatmul.msk.f32.gmra.mxu3 %vm166_vm1, %v262_v30 }
 0x1bf   : > { %v263_v31 = vpop.trf.xlu1 }
 0x1c0   : > { %2391 = vmatmul.msk.f32.gmra.mxu2 %vm166_vm1, %v263_v31  ;;  %2408 = vmatmul.msk.f32.gmra.mxu3 %vm166_vm1, %v263_v31 }
 0x1c7   : > { %v264_v32 = vpop.trf.xlu1 }
 0x1c8   : > { %2392 = vmatmul.msk.f32.gmra.mxu2 %vm166_vm1, %v264_v32  ;;  %2409 = vmatmul.msk.f32.gmra.mxu3 %vm166_vm1, %v264_v32 }
 0x1d3   : > { %v3046_v35 = vpop.f32.mrf.mxu2  ;;  %v3048_v36 = vpop.f32.mrf.mxu3 }
 0x1d4   : > { %v449_v17 = vmax.f32 %v3046_v35, %v3048_v36 }
 0x1db   : > { %v3050_v37 = vpop.f32.mrf.mxu2  ;;  %v3052_v38 = vpop.f32.mrf.mxu3 }
 0x1dc   : > { %v452_v24 = vmax.f32 %v3050_v37, %v3052_v38 }
 0x1e3   : > { %v3054_v39 = vpop.f32.mrf.mxu2  ;;  %v3056_v40 = vpop.f32.mrf.mxu3 }
 0x1e4   : > { %v455_v13 = vmax.f32 %v3054_v39, %v3056_v40 }
 0x1eb   : > { %v3058_v41 = vpop.f32.mrf.mxu2  ;;  %v3060_v42 = vpop.f32.mrf.mxu3 }
 0x1ec   : > { %v458_v23 = vmax.f32 %v3058_v41, %v3060_v42 }
 0x1f3   : > { %v3062_v43 = vpop.f32.mrf.mxu2  ;;  %v3064_v44 = vpop.f32.mrf.mxu3 }
 0x1f4   : > { %v461_v5 = vmax.f32 %v3062_v43, %v3064_v44 }
 0x1fb   : > { %v3066_v45 = vpop.f32.mrf.mxu2  ;;  %v3068_v46 = vpop.f32.mrf.mxu3 }
 0x1fc   : > { %v464_v22 = vmax.f32 %v3066_v45, %v3068_v46 }
 0x203   : > { %v3070_v47 = vpop.f32.mrf.mxu2  ;;  %v3072_v48 = vpop.f32.mrf.mxu3 }
 0x204   : > { %v467_v20 = vmax.f32 %v3070_v47, %v3072_v48 }
 0x20b   : > { %v3074_v49 = vpop.f32.mrf.mxu2  ;;  %v3076_v50 = vpop.f32.mrf.mxu3 }
 0x20c   : > { %v470_v21 = vmax.f32 %v3074_v49, %v3076_v50 }
 0x213   : > { %v3078_v51 = vpop.f32.mrf.mxu2  ;;  %v3080_v52 = vpop.f32.mrf.mxu3 }
 0x214   : > { %v473_v18 = vmax.f32 %v3078_v51, %v3080_v52 }
 0x21b   : > { %v3082_v53 = vpop.f32.mrf.mxu2  ;;  %v3084_v54 = vpop.f32.mrf.mxu3 }
 0x21c   : > { %v476_v19 = vmax.f32 %v3082_v53, %v3084_v54 }
 0x223   : > { %v366_v55 = vpop.f32.mrf.mxu2  ;;  %v431_v56 = vpop.f32.mrf.mxu3 }
 0x224   : > { %v479_v0 = vmax.f32 %v366_v55, %v431_v56 }
 0x22b   : > { %v3086_v57 = vpop.f32.mrf.mxu2  ;;  %v3088_v58 = vpop.f32.mrf.mxu3 }
 0x22c   : > { %v482_v4 = vmax.f32 %v3086_v57, %v3088_v58 }
 0x233   : > { %v372_v59 = vpop.f32.mrf.mxu2  ;;  %v437_v60 = vpop.f32.mrf.mxu3 }
 0x234   : > { %v485_v61 = vmax.f32 %v372_v59, %v437_v60 }
 0x236   : > { %486 = vmax.xlane.f32.xlu2 %v485_v61 }
 0x23b   : > { %v375_v62 = vpop.f32.mrf.mxu2  ;;  %v440_v63 = vpop.f32.mrf.mxu3 }
 0x23c   : > { %v488_v1 = vmax.f32 %v375_v62, %v440_v63 }
 0x23e   : > { %480 = vmax.xlane.f32.xlu2 %v479_v0  ;;  %489 = vmax.xlane.f32.xlu0 %v488_v1 }
 0x243   : > { %v3090_v2 = vpop.f32.mrf.mxu2  ;;  %v3092_v3 = vpop.f32.mrf.mxu3 }
 0x244   : > { %v491_v8 = vmax.f32 %v3090_v2, %v3092_v3 }
 0x246   : > { %483 = vmax.xlane.f32.xlu2 %v482_v4  ;;  %462 = vmax.xlane.f32.xlu0 %v461_v5 }
 0x247   : > { %492 = vmax.xlane.f32.xlu1 %v491_v8 }
 0x24b   : > { %v3100_v10 = vpop.f32.mrf.mxu2  ;;  %v3102_v12 = vpop.f32.mrf.mxu3 }
 0x24c   : > { %v494_v14 = vmax.f32 %v3100_v10, %v3102_v12 }
 0x24e   : > { %456 = vmax.xlane.f32.xlu0 %v455_v13  ;;  %495 = vmax.xlane.f32.xlu2 %v494_v14 }
 0x256   : > { %450 = vmax.xlane.f32.xlu0 %v449_v17  ;;  %474 = vmax.xlane.f32.xlu2 %v473_v18 }
 0x25e   : > { %477 = vmax.xlane.f32.xlu2 %v476_v19 }
 0x266   : > { %468 = vmax.xlane.f32.xlu2 %v467_v20 }
 0x26a   : > { %159 = vperm.xlu0 %2570, %v2988_v6  }
 0x26e   : > { %471 = vmax.xlane.f32.xlu2 %v470_v21 }
 0x276   : > { %465 = vmax.xlane.f32.xlu2 %v464_v22 }
 0x27e   : > { %459 = vmax.xlane.f32.xlu2 %v458_v23 }
 0x286   : > { %453 = vmax.xlane.f32.xlu2 %v452_v24 }
 0x2a9   : > { %v487_v25 = vpop.xlane.xlu2 %486 }
 0x2aa   : > { %v521_v26 = vsub.f32 %v372_v59, %v487_v25  ;;  %v522_v27 = vsub.f32 %v437_v60, %v487_v25 }
 0x2ac   : > { %v577_v6 = vmul.f32 1.442695, %v521_v26  ;;  %v579_v28 = vmul.f32 1.442695, %v522_v27 }
 0x2ae   : > { %2573 = vpow2.f32 %v577_v6 }
 0x2af   : > { %2575 = vpow2.f32 %v579_v28  ;;  %728 = vxpose.xlu2.b32.start.end [1/1] (short) %v726_v29, 128 }
 0x2b1   : > { %v481_v30 = vpop.xlane.xlu2 %480  ;;  %v490_v31 = vpop.xlane.xlu0 %489 }
 0x2b2   : > { %v517_v32 = vsub.f32 %v366_v55, %v481_v30  ;;  %v518_v61 = vsub.f32 %v431_v56, %v481_v30  ;;  %v523_v0 = vsub.f32 %v375_v62, %v490_v31  ;;  %v524_v1 = vsub.f32 %v440_v63, %v490_v31 }
 0x2b4   : > { %v3126_v4 = vpop.eup %2573  ;;  %v569_v5 = vmul.f32 1.442695, %v517_v32  ;;  %v571_v8 = vmul.f32 1.442695, %v518_v61  ;;  %v581_v13 = vmul.f32 1.442695, %v523_v0 }
 0x2b5   : > { %v3128_v59 = vpop.eup %2575  ;;  %v583_v60 = vmul.f32 1.442695, %v524_v1 }
 0x2b6   : > { %2577 = vpow2.f32 %v569_v5  ;;  %v3132_v11 = vadd.f32 %v3128_v59, %v3126_v4 }
 0x2b7   : > { %2579 = vpow2.f32 %v571_v8 }
 0x2b8   : > { %2581 = vpow2.f32 %v581_v13 }
 0x2b9   : > { %2583 = vpow2.f32 %v583_v60  ;;  %v484_v55 = vpop.xlane.xlu2 %483  ;;  %v463_v56 = vpop.xlane.xlu0 %462 }
 0x2ba   : > { %v519_v62 = vsub.f32 %v3086_v57, %v484_v55  ;;  %v520_v63 = vsub.f32 %v3088_v58, %v484_v55  ;;  %v505_v14 = vsub.f32 %v3062_v43, %v463_v56  ;;  %v506_v17 = vsub.f32 %v3064_v44, %v463_v56  ;;  %v493_v18 = vpop.xlane.xlu1 %492 }
 0x2bb   : > { %v525_v19 = vsub.f32 %v3090_v2, %v493_v18  ;;  %v526_v20 = vsub.f32 %v3092_v3, %v493_v18 }
 0x2bc   : > { %v3140_v21 = vpop.eup %2577  ;;  %v573_v22 = vmul.f32 1.442695, %v519_v62  ;;  %v575_v23 = vmul.f32 1.442695, %v520_v63  ;;  %v545_v24 = vmul.f32 1.442695, %v505_v14 }
 0x2bd   : > { %v3142_v25 = vpop.eup %2579  ;;  %v547_v26 = vmul.f32 1.442695, %v506_v17  ;;  %v585_v58 = vmul.f32 1.442695, %v525_v19  ;;  %v587_v2 = vmul.f32 1.442695, %v526_v20 }
 0x2be   : > { %v3144_v57 = vpop.eup %2581  ;;  %2585 = vpow2.f32 %v573_v22  ;;  %v3148_v43 = vadd.f32 %v3142_v25, %v3140_v21 }
 0x2bf   : > { %v3150_v44 = vpop.eup %2583  ;;  %2587 = vpow2.f32 %v575_v23 }
 0x2c0   : > { %2589 = vpow2.f32 %v545_v24  ;;  %v3154_v3 = vadd.f32 %v3150_v44, %v3144_v57 }
 0x2c1   : > { %2591 = vpow2.f32 %v547_v26  ;;  %v457_v27 = vpop.xlane.xlu0 %456  ;;  %v496_v6 = vpop.xlane.xlu2 %495 }
 0x2c2   : > { %2593 = vpow2.f32 %v585_v58  ;;  %v501_v28 = vsub.f32 %v3054_v39, %v457_v27  ;;  %v502_v29 = vsub.f32 %v3056_v40, %v457_v27  ;;  %v527_v30 = vsub.f32 %v3100_v10, %v496_v6 }
 0x2c3   : > { %2595 = vpow2.f32 %v587_v2  ;;  %v528_v31 = vsub.f32 %v3102_v12, %v496_v6 }
 0x2c4   : > { %v3160_v32 = vpop.eup %2585  ;;  %v537_v61 = vmul.f32 1.442695, %v501_v28  ;;  %v539_v0 = vmul.f32 1.442695, %v502_v29  ;;  %v589_v1 = vmul.f32 1.442695, %v527_v30 }
 0x2c5   : > { %v3162_v5 = vpop.eup %2587  ;;  %v591_v8 = vmul.f32 1.442695, %v528_v31 }
 0x2c6   : > { %v3164_v13 = vpop.eup %2589  ;;  %2597 = vpow2.f32 %v537_v61  ;;  %v3168_v39 = vadd.f32 %v3162_v5, %v3160_v32 }
 0x2c7   : > { %v3170_v40 = vpop.eup %2591  ;;  %2599 = vpow2.f32 %v539_v0 }
 0x2c8   : > { %v2594_v10 = vpop.eup %2593  ;;  %2601 = vpow2.f32 %v589_v1  ;;  %v3174_v12 = vadd.f32 %v3170_v40, %v3164_v13 }
 0x2c9   : > { %v2596_v60 = vpop.eup %2595  ;;  %2603 = vpow2.f32 %v591_v8  ;;  %v451_v55 = vpop.xlane.xlu0 %450 }
 0x2ca   : > { %v475_v56 = vpop.xlane.xlu2 %474  ;;  %v497_v62 = vsub.f32 %v3046_v35, %v451_v55  ;;  %v498_v63 = vsub.f32 %v3048_v36, %v451_v55  ;;  %v3180_v18 = vadd.f32 %v2596_v60, %v2594_v10 }
 0x2cb   : > { %v513_v14 = vsub.f32 %v3078_v51, %v475_v56  ;;  %v514_v17 = vsub.f32 %v3080_v52, %v475_v56 }
 0x2cc   : > { %v3182_v19 = vpop.eup %2597  ;;  %v529_v20 = vmul.f32 1.442695, %v497_v62  ;;  %v531_v22 = vmul.f32 1.442695, %v498_v63 }
 0x2cd   : > { %v561_v23 = vmul.f32 1.442695, %v513_v14  ;;  %v3184_v24 = vpop.eup %2599  ;;  %v563_v26 = vmul.f32 1.442695, %v514_v17 }
 0x2ce   : > { %v2602_v58 = vpop.eup %2601  ;;  %2605 = vpow2.f32 %v529_v20  ;;  %v3188_v35 = vadd.f32 %v3184_v24, %v3182_v19 }
 0x2cf   : > { %v2604_v36 = vpop.eup %2603  ;;  %2607 = vpow2.f32 %v531_v22  ;;  %v655_v51 = vpack.c.bf16 %v2602_v58, %v2594_v10  ;;  %v653_v10 = vpack.c.bf16 %v3144_v57, %v3126_v4  ;;  %v651_v4 = vpack.c.bf16 %v3160_v32, %v3140_v21 }
 0x2d0   : > { %2609 = vpow2.f32 %v561_v23  ;;  %v656_v52 = vpack.c.bf16 %v2604_v36, %v2596_v60  ;;  %v3190_v2 = vadd.f32 %v2604_v36, %v2602_v58 }
 0x2d1   : > { %2611 = vpow2.f32 %v563_v26  ;;  %664 = vmatpush.bf16.xpose.msra.mxu0 %v655_v51 }
 0x2d2   : > { %v478_v27 = vpop.xlane.xlu2 %477  ;;  %677 = vmatpush.bf16.xpose.msra.mxu1 %v656_v52 }
 0x2d3   : > { %v515_v6 = vsub.f32 %v3082_v53, %v478_v27  ;;  %v516_v28 = vsub.f32 %v3084_v54, %v478_v27  ;;  %v654_v53 = vpack.c.bf16 %v3150_v44, %v3128_v59  ;;  %v652_v59 = vpack.c.bf16 %v3162_v5, %v3142_v25 }
 0x2d4   : > { %v3194_v29 = vpop.eup %2605 }
 0x2d5   : > { %v565_v30 = vmul.f32 1.442695, %v515_v6  ;;  %v567_v31 = vmul.f32 1.442695, %v516_v28  ;;  %v3196_v61 = vpop.eup %2607 }
 0x2d6   : > { %v2610_v0 = vpop.eup %2609  ;;  %v3200_v1 = vadd.f32 %v3196_v61, %v3194_v29 }
 0x2d7   : > { %2613 = vpow2.f32 %v565_v30  ;;  %v2612_v8 = vpop.eup %2611 }
 0x2d8   : > { %2615 = vpow2.f32 %v567_v31  ;;  %v3206_v54 = vadd.f32 %v2612_v8, %v2610_v0 }
 0x2d9   : > { %665 = vmatpush.bf16.xpose.msra.mxu0 %v653_v10 }
 0x2da   : > { %v469_v60 = vpop.xlane.xlu2 %468  ;;  %678 = vmatpush.bf16.xpose.msra.mxu1 %v654_v53 }
 0x2db   : > { %v509_v55 = vsub.f32 %v3070_v47, %v469_v60  ;;  %v510_v56 = vsub.f32 %v3072_v48, %v469_v60 }
 0x2dd   : > { %v2614_v62 = vpop.eup %2613  ;;  %v553_v63 = vmul.f32 1.442695, %v509_v55  ;;  %v555_v14 = vmul.f32 1.442695, %v510_v56 }
 0x2de   : > { %v2616_v17 = vpop.eup %2615  ;;  %v649_v36 = vpack.c.bf16 %v2614_v62, %v2610_v0 }
 0x2df   : > { %2617 = vpow2.f32 %v553_v63  ;;  %v3210_v20 = vadd.f32 %v2616_v17, %v2614_v62  ;;  %v650_v21 = vpack.c.bf16 %v2616_v17, %v2612_v8 }
 0x2e0   : > { %2619 = vpow2.f32 %v555_v14 }
 0x2e1   : > { %666 = vmatpush.bf16.xpose.msra.mxu0 %v651_v4 }
 0x2e2   : > { %v472_v57 = vpop.xlane.xlu2 %471  ;;  %679 = vmatpush.bf16.xpose.msra.mxu1 %v652_v59  ;;  %v160_v59 = vpop.permute.xlu0 %159 }
 0x2e3   : > { %v511_v47 = vsub.f32 %v3074_v49, %v472_v57  ;;  %v512_v48 = vsub.f32 %v3076_v50, %v472_v57  ;;  %v202_v57 = vadd.f32 %v3042_v33, %v160_v59 }
 0x2e5   : > { %v2618_v44 = vpop.eup %2617  ;;  %v557_v22 = vmul.f32 1.442695, %v511_v47  ;;  %v559_v23 = vmul.f32 1.442695, %v512_v48 }
 0x2e6   : > { %v2620_v26 = vpop.eup %2619 }
 0x2e7   : > { %2621 = vpow2.f32 %v557_v22  ;;  %v3218_v58 = vadd.f32 %v2620_v26, %v2618_v44 }
 0x2e8   : > { %2623 = vpow2.f32 %v559_v23  ;;  %v4090_v23 = vrot.slane %v3004_v16, 4 }
 0x2e9   : > { %667 = vmatpush.bf16.xpose.msra.mxu0 %v649_v36 }
 0x2ea   : > { %v466_v32 = vpop.xlane.xlu2 %465  ;;  %680 = vmatpush.bf16.xpose.msra.mxu1 %v650_v21 }
 0x2eb   : > { %v507_v25 = vsub.f32 %v3066_v45, %v466_v32  ;;  %v508_v5 = vsub.f32 %v3068_v46, %v466_v32 }
 0x2ed   : > { %v2622_v49 = vpop.eup %2621  ;;  %v549_v51 = vmul.f32 1.442695, %v507_v25  ;;  %v551_v50 = vmul.f32 1.442695, %v508_v5 }
 0x2ee   : > { %v2624_v52 = vpop.eup %2623  ;;  %v647_v27 = vpack.c.bf16 %v2622_v49, %v2618_v44 }
 0x2ef   : > { %2625 = vpow2.f32 %v549_v51  ;;  %v648_v6 = vpack.c.bf16 %v2624_v52, %v2620_v26  ;;  %v3222_v28 = vadd.f32 %v2624_v52, %v2622_v49 }
 0x2f0   : > { %2627 = vpow2.f32 %v551_v50 }
 0x2f1   : > { %668 = vmatpush.bf16.xpose.msra.mxu0 %v647_v27 }
 0x2f2   : > { %v460_v30 = vpop.xlane.xlu2 %459  ;;  %681 = vmatpush.bf16.xpose.msra.mxu1 %v648_v6 }
 0x2f3   : > { %v503_v31 = vsub.f32 %v3058_v41, %v460_v30  ;;  %v504_v0 = vsub.f32 %v3060_v42, %v460_v30 }
 0x2f5   : > { %v2626_v45 = vpop.eup %2625  ;;  %v541_v8 = vmul.f32 1.442695, %v503_v31  ;;  %v543_v46 = vmul.f32 1.442695, %v504_v0 }
 0x2f6   : > { %v2628_v10 = vpop.eup %2627  ;;  %v645_v53 = vpack.c.bf16 %v2626_v45, %v3164_v13 }
 0x2f7   : > { %2629 = vpow2.f32 %v541_v8  ;;  %v646_v60 = vpack.c.bf16 %v2628_v10, %v3170_v40  ;;  %v3228_v55 = vadd.f32 %v2628_v10, %v2626_v45 }
 0x2f8   : > { %2631 = vpow2.f32 %v543_v46 }
 0x2f9   : > { %669 = vmatpush.bf16.xpose.msra.mxu0 %v645_v53 }
 0x2fa   : > { %v454_v56 = vpop.xlane.xlu2 %453  ;;  %682 = vmatpush.bf16.xpose.msra.mxu1 %v646_v60 }
 0x2fb   : > { %v499_v62 = vsub.f32 %v3050_v37, %v454_v56  ;;  %v500_v41 = vsub.f32 %v3052_v38, %v454_v56  ;;  %v228_v37 = vadd.f32 %v3044_v34, %v160_v59 }
 0x2fd   : > { %v2630_v42 = vpop.eup %2629  ;;  %v533_v63 = vmul.f32 1.442695, %v499_v62  ;;  %v535_v14 = vmul.f32 1.442695, %v500_v41  ;;  %v232_v44 = vpack.c.bf16 %v228_v37, %v202_v57 }
 0x2fe   : > { %v2632_v17 = vpop.eup %2631  ;;  %v643_v4 = vpack.c.bf16 %v2630_v42, %v3182_v19 }
 0x2ff   : > { %2633 = vpow2.f32 %v533_v63  ;;  %v644_v13 = vpack.c.bf16 %v2632_v17, %v3184_v24  ;;  %v3234_v40 = vadd.f32 %v2632_v17, %v2630_v42  ;;  %v4091_v24 = vrot.slane %v3002_v15, 4 }
 0x300   : > { %2635 = vpow2.f32 %v535_v14  ;;  %v658_v33 = vunpack.c.l.b16 %v232_v44  ;;  %v659_v34 = vunpack.c.h.b16 %v232_v44 }
 0x301   : > { %670 = vmatpush.bf16.xpose.msra.mxu0 %v643_v4 }
 0x302   : > { %683 = vmatpush.bf16.xpose.msra.mxu1 %v644_v13 }
 0x305   : > { %v2634_v38 = vpop.eup %2633 }
 0x306   : > { %v2636_v47 = vpop.eup %2635  ;;  %v641_v48 = vpack.c.bf16 %v2634_v38, %v3194_v29  ;;  %v3250_v29 = vpack.c.b16 %v658_v33, %v658_v33 }
 0x307   : > { %v642_v19 = vpack.c.bf16 %v2636_v47, %v3196_v61  ;;  %v3240_v22 = vadd.f32 %v2636_v47, %v2634_v38  ;;  %v3252_v61 = vpack.c.b16 %v659_v34, %v659_v34 }
 0x309   : > { %671 = vmatpush.bf16.xpose.msra.mxu0 %v641_v48  ;;  %4107 = vst [vmem:[#allocation7_spill] sm:$0xff] %v3252_v61 }
 0x30a   : > { %684 = vmatpush.bf16.xpose.msra.mxu1 %v642_v19 }
 0x310   : > { %672 = vmatmul.bf16.vlgmr.msra.gmra.mxu0 %v3250_v29 }
 0x311   : > { %2410 = vmatpush.msk.msrb.mxu0 %vm173_vm0, %v4091_v24  ;;  %685 = vmatmul.bf16.vlgmr.msra.gmra.mxu1 %v3252_v61 }
 0x312   : > { %2427 = vmatpush.msk.msrb.mxu1 %vm173_vm0, %v4090_v23 }
 0x348   : > { %v744_v26 = vpop.trf.xlu2 }
 0x349   : > { %2411 = vmatmul.msk.f32.vlgmr.msrb.gmra.mxu0 %vm166_vm1, %v744_v26  ;;  %2428 = vmatmul.msk.f32.vlgmr.msrb.gmra.mxu1 %vm166_vm1, %v744_v26 }
 0x350   : > { %v745_v36 = vpop.trf.xlu2 }
 0x351   : > { %2412 = vmatmul.msk.f32.gmra.mxu0 %vm166_vm1, %v745_v36  ;;  %2429 = vmatmul.msk.f32.gmra.mxu1 %vm166_vm1, %v745_v36 }
 0x358   : > { %v746_v21 = vpop.trf.xlu2 }
 0x359   : > { %2413 = vmatmul.msk.f32.gmra.mxu0 %vm166_vm1, %v746_v21  ;;  %2430 = vmatmul.msk.f32.gmra.mxu1 %vm166_vm1, %v746_v21 }
 0x360   : > { %v747_v32 = vpop.trf.xlu2 }
 0x361   : > { %2414 = vmatmul.msk.f32.gmra.mxu0 %vm166_vm1, %v747_v32  ;;  %2431 = vmatmul.msk.f32.gmra.mxu1 %vm166_vm1, %v747_v32 }
 0x368   : > { %v748_v25 = vpop.trf.xlu2 }
 0x369   : > { %2415 = vmatmul.msk.f32.gmra.mxu0 %vm166_vm1, %v748_v25  ;;  %2432 = vmatmul.msk.f32.gmra.mxu1 %vm166_vm1, %v748_v25 }
 0x370   : > { %v749_v5 = vpop.trf.xlu2 }
 0x371   : > { %2416 = vmatmul.msk.f32.gmra.mxu0 %vm166_vm1, %v749_v5  ;;  %2433 = vmatmul.msk.f32.gmra.mxu1 %vm166_vm1, %v749_v5 }
 0x378   : > { %v750_v49 = vpop.trf.xlu2 }
 0x379   : > { %2417 = vmatmul.msk.f32.gmra.mxu0 %vm166_vm1, %v750_v49  ;;  %2434 = vmatmul.msk.f32.gmra.mxu1 %vm166_vm1, %v750_v49 }
 0x380   : > { %v751_v51 = vpop.trf.xlu2 }
 0x381   : > { %2418 = vmatmul.msk.f32.gmra.mxu0 %vm166_vm1, %v751_v51  ;;  %2435 = vmatmul.msk.f32.gmra.mxu1 %vm166_vm1, %v751_v51 }
 0x388   : > { %v752_v50 = vpop.trf.xlu2 }
 0x389   : > { %2419 = vmatmul.msk.f32.gmra.mxu0 %vm166_vm1, %v752_v50  ;;  %2436 = vmatmul.msk.f32.gmra.mxu1 %vm166_vm1, %v752_v50 }
 0x38d   : > { %v3274_v52 = vpop.f32.mrf.mxu0 }
 0x38e   : > { %4108 = vst [vmem:[#allocation8_spill] sm:$0xff] %v3274_v52  ;;  %v3276_v27 = vpop.f32.mrf.mxu1 }
 0x38f   : > { %4109 = vst [vmem:[#allocation9_spill] sm:$0xff] %v3276_v27 }
 0x390   : > { %v753_v6 = vpop.trf.xlu2 }
 0x391   : > { %2420 = vmatmul.msk.f32.gmra.mxu0 %vm166_vm1, %v753_v6  ;;  %2437 = vmatmul.msk.f32.gmra.mxu1 %vm166_vm1, %v753_v6 }
 0x395   : > { %v675_v30 = vpop.f32.mrf.mxu0 }
 0x396   : > { %v688_v31 = vpop.f32.mrf.mxu1 }
 0x398   : > { %v754_v0 = vpop.trf.xlu2 }
 0x399   : > { %2421 = vmatmul.msk.f32.gmra.mxu0 %vm166_vm1, %v754_v0  ;;  %2438 = vmatmul.msk.f32.gmra.mxu1 %vm166_vm1, %v754_v0 }
 0x3a0   : > { %v755_v45 = vpop.trf.xlu2 }
 0x3a1   : > { %2422 = vmatmul.msk.f32.gmra.mxu0 %vm166_vm1, %v755_v45  ;;  %2439 = vmatmul.msk.f32.gmra.mxu1 %vm166_vm1, %v755_v45 }
 0x3a8   : > { %v756_v8 = vpop.trf.xlu2 }
 0x3a9   : > { %2423 = vmatmul.msk.f32.gmra.mxu0 %vm166_vm1, %v756_v8  ;;  %2440 = vmatmul.msk.f32.gmra.mxu1 %vm166_vm1, %v756_v8 }
 0x3b0   : > { %v757_v46 = vpop.trf.xlu2 }
 0x3b1   : > { %2424 = vmatmul.msk.f32.gmra.mxu0 %vm166_vm1, %v757_v46  ;;  %2441 = vmatmul.msk.f32.gmra.mxu1 %vm166_vm1, %v757_v46 }
 0x3b8   : > { %v758_v10 = vpop.trf.xlu2 }
 0x3b9   : > { %2425 = vmatmul.msk.f32.gmra.mxu0 %vm166_vm1, %v758_v10  ;;  %2442 = vmatmul.msk.f32.gmra.mxu1 %vm166_vm1, %v758_v10 }
 0x3c0   : > { %v759_v53 = vpop.trf.xlu2 }
 0x3c1   : > { %2426 = vmatmul.msk.f32.gmra.mxu0 %vm166_vm1, %v759_v53  ;;  %2443 = vmatmul.msk.f32.gmra.mxu1 %vm166_vm1, %v759_v53 }
 0x3c6   : > { %v3292_v60 = vpop.f32.mrf.mxu0  ;;  %v3294_v56 = vpop.f32.mrf.mxu1 }
 0x3ce   : > { %v3296_v62 = vpop.f32.mrf.mxu0  ;;  %v3298_v41 = vpop.f32.mrf.mxu1 }
 0x3cf   : > { %v947_v57 = vmax.f32 %v3296_v62, %v3298_v41 }
 0x3d6   : > { %v3300_v42 = vpop.f32.mrf.mxu0  ;;  %v3302_v63 = vpop.f32.mrf.mxu1 }
 0x3de   : > { %v3304_v14 = vpop.f32.mrf.mxu0  ;;  %v3306_v17 = vpop.f32.mrf.mxu1 }
 0x3df   : > { %v953_v4 = vmax.f32 %v3304_v14, %v3306_v17 }
 0x3e1   : > { %954 = vmax.xlane.f32.xlu1 %v953_v4 }
 0x3e6   : > { %v3310_v13 = vpop.f32.mrf.mxu0  ;;  %v3312_v59 = vpop.f32.mrf.mxu1 }
 0x3e9   : > { %948 = vmax.xlane.f32.xlu1 %v947_v57  ;;  %v3355_v57 = vld [vmem:[%s4088_s1 + $0x18] sm:$0xff] }
 0x3ea   : > { %4110 = vst [vmem:[#allocation10_spill] sm:$0xff] %v3355_v57 }
 0x3ee   : > { %v3316_v37 = vpop.f32.mrf.mxu0  ;;  %v3318_v38 = vpop.f32.mrf.mxu1 }
 0x3f6   : > { %v3320_v47 = vpop.f32.mrf.mxu0  ;;  %v3322_v48 = vpop.f32.mrf.mxu1 }
 0x3fe   : > { %v3324_v44 = vpop.f32.mrf.mxu0  ;;  %v3326_v19 = vpop.f32.mrf.mxu1 }
 0x406   : > { %v3328_v33 = vpop.f32.mrf.mxu0  ;;  %v3330_v34 = vpop.f32.mrf.mxu1 }
 0x40e   : > { %v3332_v26 = vpop.f32.mrf.mxu0  ;;  %v3334_v36 = vpop.f32.mrf.mxu1 }
 0x416   : > { %v3336_v21 = vpop.f32.mrf.mxu0  ;;  %v3338_v32 = vpop.f32.mrf.mxu1 }
 0x417   : > { %v974_v4 = vmax.f32 %v3336_v21, %v3338_v32 }
 0x41e   : > { %v3340_v25 = vpop.f32.mrf.mxu0  ;;  %v3342_v5 = vpop.f32.mrf.mxu1 }
 0x426   : > { %v867_v49 = vpop.f32.mrf.mxu0  ;;  %v932_v51 = vpop.f32.mrf.mxu1 }
 0x427   : > { %v980_v46 = vmax.f32 %v867_v49, %v932_v51 }
 0x42e   : > { %v3344_v50 = vpop.f32.mrf.mxu0  ;;  %v3346_v6 = vpop.f32.mrf.mxu1 }
 0x42f   : > { %v983_v53 = vmax.f32 %v3344_v50, %v3346_v6 }
 0x436   : > { %v873_v30 = vpop.f32.mrf.mxu0  ;;  %v938_v31 = vpop.f32.mrf.mxu1 }
 0x437   : > { %v986_v0 = vmax.f32 %v873_v30, %v938_v31 }
 0x439   : > { %987 = vmax.xlane.f32.xlu0 %v986_v0  ;;  %v977_v0 = vmax.f32 %v3340_v25, %v3342_v5 }
 0x43e   : > { %v876_v45 = vpop.f32.mrf.mxu0  ;;  %v941_v8 = vpop.f32.mrf.mxu1 }
 0x43f   : > { %v989_v10 = vmax.f32 %v876_v45, %v941_v8 }
 0x441   : > { %981 = vmax.xlane.f32.xlu0 %v980_v46  ;;  %990 = vmax.xlane.f32.xlu2 %v989_v10  ;;  %v968_v46 = vmax.f32 %v3328_v33, %v3330_v34  ;;  %v971_v10 = vmax.f32 %v3332_v26, %v3334_v36 }
 0x449   : > { %984 = vmax.xlane.f32.xlu0 %v983_v53  ;;  %v962_v53 = vmax.f32 %v3320_v47, %v3322_v48 }
 0x451   : > { %975 = vmax.xlane.f32.xlu0 %v974_v4  ;;  %v965_v4 = vmax.f32 %v3324_v44, %v3326_v19 }
 0x459   : > { %978 = vmax.xlane.f32.xlu0 %v977_v0  ;;  %1218 = vrot.lane.b32.xlu2 %v3355_v57, %s2903_s6  ;;  %v222_v0 = vadd.f32 %v2996_v9, %v2994_v7  ;;  %v944_v7 = vmax.f32 %v3292_v60, %v3294_v56 }
 0x45b   : > { %v3370_v23 = vmul.f32 0.5, %v222_v0 }
 0x45d   : > { %4111 = vst [vmem:[#allocation11_spill] sm:$0xff] %v3370_v23 }
 0x461   : > { %969 = vmax.xlane.f32.xlu0 %v968_v46  ;;  %v956_v46 = vmax.f32 %v3310_v13, %v3312_v59 }
 0x469   : > { %972 = vmax.xlane.f32.xlu0 %v971_v10  ;;  %v959_v10 = vmax.f32 %v3316_v37, %v3318_v38 }
 0x471   : > { %963 = vmax.xlane.f32.xlu0 %v962_v53  ;;  %v950_v53 = vmax.f32 %v3300_v42, %v3302_v63 }
 0x479   : > { %966 = vmax.xlane.f32.xlu0 %v965_v4 }
 0x47f   : > { %1276 = vxpose.xlu2.b32.start.end [1/1] (short) %v3370_v23, 128 }
 0x481   : > { %957 = vmax.xlane.f32.xlu0 %v956_v46 }
 0x489   : > { %960 = vmax.xlane.f32.xlu0 %v959_v10 }
 0x491   : > { %951 = vmax.xlane.f32.xlu0 %v950_v53 }
 0x499   : > { %945 = vmax.xlane.f32.xlu0 %v944_v7 }
 0x4a1   : > { %594 = vadd.xlane.f32.xlu0 %v3200_v1 }
 0x4a9   : > { %597 = vadd.xlane.f32.xlu0 %v3240_v22 }
 0x4ac   : > { %v988_v9 = vpop.xlane.xlu0 %987 }
 0x4ad   : > { %v1020_v4 = vsub.f32 %v873_v30, %v988_v9  ;;  %v1021_v0 = vsub.f32 %v938_v31, %v988_v9 }
 0x4af   : > { %v1080_v46 = vmul.f32 1.442695, %v1020_v4  ;;  %v1082_v24 = vmul.f32 1.442695, %v1021_v0 }
 0x4b1   : > { %2637 = vpow2.f32 %v1080_v46  ;;  %600 = vadd.xlane.f32.xlu0 %v3188_v35 }
 0x4b2   : > { %2639 = vpow2.f32 %v1082_v24 }
 0x4b4   : > { %v982_v10 = vpop.xlane.xlu0 %981  ;;  %v991_v23 = vpop.xlane.xlu2 %990 }
 0x4b5   : > { %v1016_v53 = vsub.f32 %v867_v49, %v982_v10  ;;  %v1017_v15 = vsub.f32 %v932_v51, %v982_v10  ;;  %v1022_v57 = vsub.f32 %v876_v45, %v991_v23  ;;  %v1023_v16 = vsub.f32 %v941_v8, %v991_v23 }
 0x4b7   : > { %v2638_v7 = vpop.eup %2637  ;;  %v1072_v27 = vmul.f32 1.442695, %v1016_v53  ;;  %v1074_v1 = vmul.f32 1.442695, %v1017_v15  ;;  %v1084_v52 = vmul.f32 1.442695, %v1022_v57 }
 0x4b8   : > { %v2640_v22 = vpop.eup %2639  ;;  %v1086_v61 = vmul.f32 1.442695, %v1023_v16 }
 0x4b9   : > { %2641 = vpow2.f32 %v1072_v27  ;;  %603 = vadd.xlane.f32.xlu0 %v3234_v40  ;;  %v3385_v30 = vadd.f32 %v2640_v22, %v2638_v7 }
 0x4ba   : > { %2643 = vpow2.f32 %v1074_v1 }
 0x4bb   : > { %2645 = vpow2.f32 %v1084_v52 }
 0x4bc   : > { %2647 = vpow2.f32 %v1086_v61  ;;  %v985_v35 = vpop.xlane.xlu0 %984 }
 0x4bd   : > { %v1018_v24 = vsub.f32 %v3344_v50, %v985_v35  ;;  %v1019_v49 = vsub.f32 %v3346_v6, %v985_v35 }
 0x4bf   : > { %v2642_v23 = vpop.eup %2641  ;;  %v1076_v51 = vmul.f32 1.442695, %v1018_v24  ;;  %v1078_v31 = vmul.f32 1.442695, %v1019_v49 }
 0x4c0   : > { %v2644_v15 = vpop.eup %2643 }
 0x4c1   : > { %v3389_v45 = vpop.eup %2645  ;;  %2649 = vpow2.f32 %v1076_v51  ;;  %606 = vadd.xlane.f32.xlu0 %v3174_v12  ;;  %v3392_v16 = vadd.f32 %v2644_v15, %v2642_v23 }
 0x4c2   : > { %v3394_v40 = vpop.eup %2647  ;;  %2651 = vpow2.f32 %v1078_v31  ;;  %v1150_v61 = vpack.c.bf16 %v3389_v45, %v2638_v7 }
 0x4c3   : > { %v1151_v52 = vpack.c.bf16 %v3394_v40, %v2640_v22 }
 0x4c4   : > { %1156 = vmatpush.bf16.xpose.msra.mxu2 %v1150_v61  ;;  %v976_v27 = vpop.xlane.xlu0 %975 }
 0x4c5   : > { %1169 = vmatpush.bf16.xpose.msra.mxu3 %v1151_v52  ;;  %v1012_v50 = vsub.f32 %v3336_v21, %v976_v27  ;;  %v1013_v6 = vsub.f32 %v3338_v32, %v976_v27 }
 0x4c7   : > { %v2650_v8 = vpop.eup %2649  ;;  %v1064_v57 = vmul.f32 1.442695, %v1012_v50  ;;  %v1066_v9 = vmul.f32 1.442695, %v1013_v6 }
 0x4c8   : > { %v2652_v12 = vpop.eup %2651  ;;  %v1148_v4 = vpack.c.bf16 %v2650_v8, %v2642_v23 }
 0x4c9   : > { %2653 = vpow2.f32 %v1064_v57  ;;  %609 = vadd.xlane.f32.xlu0 %v3228_v55  ;;  %v1149_v0 = vpack.c.bf16 %v2652_v12, %v2644_v15  ;;  %v3401_v46 = vadd.f32 %v2652_v12, %v2650_v8 }
 0x4ca   : > { %2655 = vpow2.f32 %v1066_v9 }
 0x4cc   : > { %1157 = vmatpush.bf16.xpose.msra.mxu2 %v1148_v4  ;;  %v979_v10 = vpop.xlane.xlu0 %978 }
 0x4cd   : > { %1170 = vmatpush.bf16.xpose.msra.mxu3 %v1149_v0  ;;  %v1014_v53 = vsub.f32 %v3340_v25, %v979_v10  ;;  %v1015_v21 = vsub.f32 %v3342_v5, %v979_v10 }
 0x4cf   : > { %v2654_v32 = vpop.eup %2653  ;;  %v1068_v7 = vmul.f32 1.442695, %v1014_v53  ;;  %v1070_v1 = vmul.f32 1.442695, %v1015_v21 }
 0x4d0   : > { %v2656_v22 = vpop.eup %2655 }
 0x4d1   : > { %2657 = vpow2.f32 %v1068_v7  ;;  %612 = vadd.xlane.f32.xlu0 %v3218_v58  ;;  %v3406_v35 = vadd.f32 %v2656_v22, %v2654_v32 }
 0x4d2   : > { %2659 = vpow2.f32 %v1070_v1 }
 0x4d4   : > { %v970_v55 = vpop.xlane.xlu0 %969 }
 0x4d5   : > { %v1008_v24 = vsub.f32 %v3328_v33, %v970_v55  ;;  %v1009_v49 = vsub.f32 %v3330_v34, %v970_v55 }
 0x4d7   : > { %v2658_v23 = vpop.eup %2657  ;;  %v1056_v51 = vmul.f32 1.442695, %v1008_v24  ;;  %v1058_v25 = vmul.f32 1.442695, %v1009_v49 }
 0x4d8   : > { %v2660_v31 = vpop.eup %2659  ;;  %v1146_v5 = vpack.c.bf16 %v2658_v23, %v2654_v32 }
 0x4d9   : > { %2661 = vpow2.f32 %v1056_v51  ;;  %615 = vadd.xlane.f32.xlu0 %v3222_v28  ;;  %v1147_v15 = vpack.c.bf16 %v2660_v31, %v2656_v22  ;;  %v3411_v61 = vadd.f32 %v2660_v31, %v2658_v23 }
 0x4da   : > { %2663 = vpow2.f32 %v1058_v25  ;;  %1158 = vmatpush.bf16.xpose.msra.mxu2 %v1146_v5  ;;  %v955_v25 = vpop.xlane.xlu1 %954 }
 0x4db   : > { %1171 = vmatpush.bf16.xpose.msra.mxu3 %v1147_v15 }
 0x4dc   : > { %v973_v58 = vpop.xlane.xlu0 %972 }
 0x4dd   : > { %v1010_v52 = vsub.f32 %v3332_v26, %v973_v58  ;;  %v1011_v33 = vsub.f32 %v3334_v36, %v973_v58 }
 0x4df   : > { %v2662_v34 = vpop.eup %2661  ;;  %v1060_v27 = vmul.f32 1.442695, %v1010_v52  ;;  %v1062_v50 = vmul.f32 1.442695, %v1011_v33  ;;  %v3439_v33 = vadd.f32 %v3394_v40, %v3389_v45 }
 0x4e0   : > { %v2664_v6 = vpop.eup %2663 }
 0x4e1   : > { %2665 = vpow2.f32 %v1060_v27  ;;  %618 = vadd.xlane.f32.xlu0 %v3206_v54  ;;  %v3416_v8 = vadd.f32 %v2664_v6, %v2662_v34 }
 0x4e2   : > { %2667 = vpow2.f32 %v1062_v50  ;;  %v949_v27 = vpop.xlane.xlu1 %948 }
 0x4e3   : > { %v994_v45 = vsub.f32 %v3296_v62, %v949_v27 }
 0x4e4   : > { %v964_v28 = vpop.xlane.xlu0 %963 }
 0x4e5   : > { %v1004_v57 = vsub.f32 %v3320_v47, %v964_v28  ;;  %v1005_v9 = vsub.f32 %v3322_v48, %v964_v28 }
 0x4e7   : > { %v2666_v12 = vpop.eup %2665  ;;  %v1048_v4 = vmul.f32 1.442695, %v1004_v57  ;;  %v1050_v26 = vmul.f32 1.442695, %v1005_v9 }
 0x4e8   : > { %v2668_v0 = vpop.eup %2667  ;;  %v1144_v36 = vpack.c.bf16 %v2666_v12, %v2662_v34 }
 0x4e9   : > { %2669 = vpow2.f32 %v1048_v4  ;;  %621 = vadd.xlane.f32.xlu0 %v3210_v20  ;;  %v1145_v10 = vpack.c.bf16 %v2668_v0, %v2664_v6  ;;  %v3421_v53 = vadd.f32 %v2668_v0, %v2666_v12 }
 0x4ea   : > { %2671 = vpow2.f32 %v1050_v26  ;;  %1159 = vmatpush.bf16.xpose.msra.mxu2 %v1144_v36 }
 0x4eb   : > { %1172 = vmatpush.bf16.xpose.msra.mxu3 %v1145_v10 }
 0x4ec   : > { %v967_v54 = vpop.xlane.xlu0 %966 }
 0x4ed   : > { %v1006_v21 = vsub.f32 %v3324_v44, %v967_v54  ;;  %v1007_v47 = vsub.f32 %v3326_v19, %v967_v54 }
 0x4ef   : > { %v2670_v48 = vpop.eup %2669  ;;  %v1052_v32 = vmul.f32 1.442695, %v1006_v21  ;;  %v1054_v7 = vmul.f32 1.442695, %v1007_v47 }
 0x4f0   : > { %v2672_v1 = vpop.eup %2671 }
 0x4f1   : > { %2673 = vpow2.f32 %v1052_v32  ;;  %624 = vadd.xlane.f32.xlu0 %v3148_v43  ;;  %v3426_v22 = vadd.f32 %v2672_v1, %v2670_v48 }
 0x4f2   : > { %2675 = vpow2.f32 %v1054_v7 }
 0x4f4   : > { %v958_v20 = vpop.xlane.xlu0 %957 }
 0x4f5   : > { %v1000_v24 = vsub.f32 %v3310_v13, %v958_v20  ;;  %v1001_v23 = vsub.f32 %v3312_v59, %v958_v20  ;;  %v998_v13 = vsub.f32 %v3304_v14, %v955_v25 }
 0x4f7   : > { %v2674_v55 = vpop.eup %2673  ;;  %v1040_v31 = vmul.f32 1.442695, %v1000_v24  ;;  %v1042_v43 = vmul.f32 1.442695, %v1001_v23  ;;  %v1036_v34 = vmul.f32 1.442695, %v998_v13 }
 0x4f8   : > { %v2676_v49 = vpop.eup %2675  ;;  %v1142_v44 = vpack.c.bf16 %v2674_v55, %v2670_v48  ;;  %v4102_v24 = vrot.slane %v3250_v29, 2 }
 0x4f9   : > { %627 = vadd.xlane.f32.xlu0 %v3168_v39  ;;  %v1143_v19 = vpack.c.bf16 %v2676_v49, %v2672_v1  ;;  %v3431_v51 = vadd.f32 %v2676_v49, %v2674_v55  ;;  %2677 = vpow2.f32 %v1040_v31  ;;  %v999_v39 = vsub.f32 %v3306_v17, %v955_v25  ;;  %v4112_v49 = vld [vmem:[#allocation7_spill] sm:$0xff] }
 0x4fa   : > { %1160 = vmatpush.bf16.xpose.msra.mxu2 %v1142_v44  ;;  %2679 = vpow2.f32 %v1042_v43 }
 0x4fb   : > { %1173 = vmatpush.bf16.xpose.msra.mxu3 %v1143_v19 }
 0x4fc   : > { %v961_v5 = vpop.xlane.xlu0 %960 }
 0x4fd   : > { %v1002_v15 = vsub.f32 %v3316_v37, %v961_v5  ;;  %v1003_v58 = vsub.f32 %v3318_v38, %v961_v5  ;;  %v1038_v37 = vmul.f32 1.442695, %v999_v39 }
 0x4ff   : > { %v1044_v59 = vmul.f32 1.442695, %v1002_v15  ;;  %v1046_v52 = vmul.f32 1.442695, %v1003_v58  ;;  %v3442_v50 = vpop.eup %2677 }
 0x500   : > { %v2680_v17 = vpop.eup %2679 }
 0x501   : > { %2681 = vpow2.f32 %v1044_v59  ;;  %630 = vadd.xlane.f32.xlu0 %v3132_v11  ;;  %v995_v11 = vsub.f32 %v3298_v41, %v949_v27  ;;  %v1100_v43 = vadd.f32 %v2680_v17, %v3442_v50 }
 0x502   : > { %2683 = vpow2.f32 %v1046_v52 }
 0x503   : > { %2685 = vpow2.f32 %v1036_v34 }
 0x504   : > { %v952_v38 = vpop.xlane.xlu0 %951  ;;  %2687 = vpow2.f32 %v1038_v37 }
 0x505   : > { %v996_v14 = vsub.f32 %v3300_v42, %v952_v38  ;;  %v997_v6 = vsub.f32 %v3302_v63, %v952_v38  ;;  %v1028_v42 = vmul.f32 1.442695, %v994_v45  ;;  %v1030_v63 = vmul.f32 1.442695, %v995_v11 }
 0x507   : > { %v2682_v28 = vpop.eup %2681  ;;  %v1032_v40 = vmul.f32 1.442695, %v996_v14  ;;  %v1034_v57 = vmul.f32 1.442695, %v997_v6 }
 0x508   : > { %v2684_v9 = vpop.eup %2683  ;;  %v1140_v12 = vpack.c.bf16 %v2682_v28, %v3442_v50 }
 0x509   : > { %2689 = vpow2.f32 %v1032_v40  ;;  %633 = vadd.xlane.f32.xlu0 %v3154_v3  ;;  %v1141_v4 = vpack.c.bf16 %v2684_v9, %v2680_v17  ;;  %v2686_v0 = vpop.eup %2685  ;;  %v1103_v15 = vadd.f32 %v2684_v9, %v2682_v28  ;;  %v4114_v9 = vld [vmem:[#allocation9_spill] sm:$0xff] }
 0x50a   : > { %2691 = vpow2.f32 %v1034_v57  ;;  %1161 = vmatpush.bf16.xpose.msra.mxu2 %v1140_v12  ;;  %v2688_v10 = vpop.eup %2687  ;;  %v4113_v57 = vld [vmem:[#allocation8_spill] sm:$0xff] }
 0x50b   : > { %1174 = vmatpush.bf16.xpose.msra.mxu3 %v1141_v4  ;;  %2693 = vpow2.f32 %v1028_v42  ;;  %v1097_v25 = vadd.f32 %v2688_v10, %v2686_v0  ;;  %v687_v11 = vadd.f32 %v4114_v9, %v4113_v57  ;;  %v4115_v42 = vld [vmem:[#allocation6_spill] sm:$0xff] }
 0x50c   : > { %v946_v26 = vpop.xlane.xlu0 %945  ;;  %2695 = vpow2.f32 %v1030_v63 }
 0x50d   : > { %v992_v62 = vsub.f32 %v3292_v60, %v946_v26  ;;  %v993_v36 = vsub.f32 %v3294_v56, %v946_v26  ;;  %v4116_v26 = vld [vmem:[#allocation10_spill] sm:$0xff] }
 0x50f   : > { %v2690_v54 = vpop.eup %2689  ;;  %v1024_v41 = vmul.f32 1.442695, %v992_v62  ;;  %v1026_v21 = vmul.f32 1.442695, %v993_v36 }
 0x510   : > { %v2692_v47 = vpop.eup %2691  ;;  %v1138_v3 = vpack.c.bf16 %v2686_v0, %v2690_v54 }
 0x511   : > { %2697 = vpow2.f32 %v1024_v41  ;;  %636 = vadd.xlane.f32.xlu0 %v3180_v18  ;;  %v1139_v48 = vpack.c.bf16 %v2688_v10, %v2692_v47  ;;  %v2694_v32 = vpop.eup %2693  ;;  %v4101_v18 = vrot.slane %v4112_v49, 2  ;;  %v1094_v19 = vadd.f32 %v2692_v47, %v2690_v54 }
 0x512   : > { %2699 = vpow2.f32 %v1026_v21  ;;  %1162 = vmatpush.bf16.xpose.msra.mxu2 %v1138_v3  ;;  %v2696_v7 = vpop.eup %2695  ;;  %v3478_v3 = vpop.permute.xlu2 %1218 }
 0x513   : > { %1175 = vmatpush.bf16.xpose.msra.mxu3 %v1139_v48  ;;  %v1091_v23 = vadd.f32 %v2696_v7, %v2694_v32 }
 0x514   : > { %v595_v44 = vpop.xlane.xlu0 %594 }
 0x517   : > { %v2698_v60 = vpop.eup %2697 }
 0x518   : > { %v2700_v1 = vpop.eup %2699  ;;  %v1136_v56 = vpack.c.bf16 %v2694_v32, %v2698_v60 }
 0x519   : > { %639 = vadd.xlane.f32.xlu0 %v3190_v2  ;;  %v1088_v20 = vadd.f32 %v2700_v1, %v2698_v60  ;;  %v1137_v55 = vpack.c.bf16 %v2696_v7, %v2700_v1 }
 0x51a   : > { %1163 = vmatpush.bf16.xpose.msra.mxu2 %v1136_v56  ;;  %v1292_v48 = vpop.trf.xlu2 }
 0x51b   : > { %1089 = vadd.xlane.f32.xlu1 %v1088_v20  ;;  %1176 = vmatpush.bf16.xpose.msra.mxu3 %v1137_v55 }
 0x51c   : > { %v598_v2 = vpop.xlane.xlu0 %597 }
 0x521   : > { %1164 = vmatmul.bf16.vlgmr.msra.gmra.mxu2 %v4102_v24 }
 0x522   : > { %1177 = vmatmul.bf16.vlgmr.msra.gmra.mxu3 %v4101_v18  ;;  %v1293_v32 = vpop.trf.xlu2 }
 0x523   : > { %1092 = vadd.xlane.f32.xlu1 %v1091_v23  ;;  %v4117_v23 = vld [vmem:[#allocation5_spill] sm:$0xff] }
 0x524   : > { %v601_v31 = vpop.xlane.xlu0 %600 }
 0x52a   : > { %v1294_v7 = vpop.trf.xlu2 }
 0x52b   : > { %1095 = vadd.xlane.f32.xlu1 %v1094_v19 }
 0x52c   : > { %v604_v5 = vpop.xlane.xlu0 %603 }
 0x532   : > { %v1295_v1 = vpop.trf.xlu2 }
 0x533   : > { %1098 = vadd.xlane.f32.xlu1 %v1097_v25 }
 0x534   : > { %v607_v58 = vpop.xlane.xlu0 %606 }
 0x53b   : > { %1101 = vadd.xlane.f32.xlu1 %v1100_v43 }
 0x53c   : > { %v610_v13 = vpop.xlane.xlu0 %609 }
 0x542   : > { %690 = vxpose.xlu0.b32.start [1/16] (narrow) %v595_v44, 8  ;;  %v1296_v44 = vpop.trf.xlu2 }
 0x543   : > { %1104 = vadd.xlane.f32.xlu1 %v1103_v15 }
 0x544   : > { %v613_v59 = vpop.xlane.xlu0 %612 }
 0x54a   : > { %691 = vxpose.xlu0.b32.cont [2/16] (narrow) %v598_v2, 8  ;;  %v1297_v19 = vpop.trf.xlu2 }
 0x54b   : > { %1107 = vadd.xlane.f32.xlu1 %v3426_v22 }
 0x54c   : > { %v616_v52 = vpop.xlane.xlu0 %615 }
 0x552   : > { %692 = vxpose.xlu0.b32.cont [3/16] (narrow) %v601_v31, 8  ;;  %v1298_v2 = vpop.trf.xlu2 }
 0x553   : > { %1110 = vadd.xlane.f32.xlu1 %v3431_v51 }
 0x554   : > { %v619_v39 = vpop.xlane.xlu0 %618 }
 0x55a   : > { %693 = vxpose.xlu0.b32.cont [4/16] (narrow) %v604_v5, 8  ;;  %v1299_v25 = vpop.trf.xlu2 }
 0x55b   : > { %1113 = vadd.xlane.f32.xlu1 %v3416_v8 }
 0x55c   : > { %v622_v22 = vpop.xlane.xlu0 %621 }
 0x562   : > { %694 = vxpose.xlu0.b32.cont [5/16] (narrow) %v607_v58, 8  ;;  %v1300_v31 = vpop.trf.xlu2 }
 0x563   : > { %1116 = vadd.xlane.f32.xlu1 %v3421_v53 }
 0x564   : > { %v625_v8 = vpop.xlane.xlu0 %624 }
 0x56a   : > { %695 = vxpose.xlu0.b32.cont [6/16] (narrow) %v610_v13, 8  ;;  %v1301_v43 = vpop.trf.xlu2 }
 0x56b   : > { %1119 = vadd.xlane.f32.xlu1 %v3406_v35 }
 0x56c   : > { %v628_v53 = vpop.xlane.xlu0 %627 }
 0x572   : > { %696 = vxpose.xlu0.b32.cont [7/16] (narrow) %v613_v59, 8  ;;  %v1302_v5 = vpop.trf.xlu2 }
 0x573   : > { %1122 = vadd.xlane.f32.xlu1 %v3411_v61 }
 0x574   : > { %v631_v35 = vpop.xlane.xlu0 %630 }
 0x57a   : > { %697 = vxpose.xlu0.b32.cont [8/16] (narrow) %v616_v52, 8  ;;  %v1303_v15 = vpop.trf.xlu2 }
 0x57b   : > { %1125 = vadd.xlane.f32.xlu1 %v3392_v16 }
 0x57c   : > { %v634_v61 = vpop.xlane.xlu0 %633 }
 0x582   : > { %698 = vxpose.xlu0.b32.cont [9/16] (narrow) %v619_v39, 8  ;;  %v1304_v58 = vpop.trf.xlu2 }
 0x583   : > { %1128 = vadd.xlane.f32.xlu1 %v3401_v46 }
 0x584   : > { %v637_v46 = vpop.xlane.xlu0 %636 }
 0x58a   : > { %699 = vxpose.xlu0.b32.cont [10/16] (narrow) %v622_v22, 8  ;;  %v1305_v13 = vpop.trf.xlu2 }
 0x58b   : > { %1131 = vadd.xlane.f32.xlu1 %v3385_v30 }
 0x58c   : > { %v640_v14 = vpop.xlane.xlu0 %639 }
 0x58e   : > { %v1090_v38 = vpop.xlane.xlu1 %1089 }
 0x592   : > { %700 = vxpose.xlu0.b32.cont [11/16] (narrow) %v625_v8, 8  ;;  %v1306_v59 = vpop.trf.xlu2 }
 0x593   : > { %1134 = vadd.xlane.f32.xlu1 %v3439_v33 }
 0x596   : > { %v1093_v50 = vpop.xlane.xlu1 %1092 }
 0x59a   : > { %701 = vxpose.xlu0.b32.cont [12/16] (narrow) %v628_v53, 8  ;;  %v1307_v52 = vpop.trf.xlu2 }
 0x59e   : > { %v1096_v30 = vpop.xlane.xlu1 %1095 }
 0x5a2   : > { %702 = vxpose.xlu0.b32.cont [13/16] (narrow) %v631_v35, 8 }
 0x5a4   : > { %v1165_v51 = vpop.f32.mrf.mxu2 }
 0x5a5   : > { %v1178_v34 = vpop.f32.mrf.mxu3 }
 0x5a6   : > { %v1179_v37 = vadd.f32 %v1178_v34, %v1165_v51  ;;  %v1099_v6 = vpop.xlane.xlu1 %1098 }
 0x5aa   : > { %703 = vxpose.xlu0.b32.cont [14/16] (narrow) %v634_v61, 8 }
 0x5ac   : > { %v1167_v16 = vpop.f32.mrf.mxu2 }
 0x5ad   : > { %v1180_v27 = vpop.f32.mrf.mxu3 }
 0x5ae   : > { %v1102_v33 = vpop.xlane.xlu1 %1101 }
 0x5b2   : > { %704 = vxpose.xlu0.b32.cont [15/16] (narrow) %v637_v46, 8 }
 0x5b6   : > { %v1105_v17 = vpop.xlane.xlu1 %1104 }
 0x5ba   : > { %705 = vxpose.xlu0.b32.end [16/16] (narrow) %v640_v14, 8 }
 0x5be   : > { %v1108_v45 = vpop.xlane.xlu1 %1107 }
 0x5c6   : > { %v1111_v63 = vpop.xlane.xlu1 %1110 }
 0x5cd   : > { %1182 = vxpose.xlu1.b32.start [1/16] (narrow) %v1090_v38, 8 }
 0x5ce   : > { %v1114_v0 = vpop.xlane.xlu1 %1113 }
 0x5d5   : > { %1183 = vxpose.xlu1.b32.cont [2/16] (narrow) %v1093_v50, 8 }
 0x5d6   : > { %v1117_v62 = vpop.xlane.xlu1 %1116 }
 0x5dd   : > { %1184 = vxpose.xlu1.b32.cont [3/16] (narrow) %v1096_v30, 8 }
 0x5de   : > { %v1120_v36 = vpop.xlane.xlu1 %1119 }
 0x5e5   : > { %1185 = vxpose.xlu1.b32.cont [4/16] (narrow) %v1099_v6, 8 }
 0x5e6   : > { %v706_v28 = vpop.trf.xlu0  ;;  %v1123_v10 = vpop.xlane.xlu1 %1122 }
 0x5e7   : > { %2701 = vrcp.f32 %v706_v28 }
 0x5ed   : > { %v2702_v40 = vpop.eup %2701  ;;  %1186 = vxpose.xlu1.b32.cont [5/16] (narrow) %v1102_v33, 8 }
 0x5ee   : > { %v723_v12 = vperm.slane %v2702_v40, 0  ;;  %v1126_v54 = vpop.xlane.xlu1 %1125 }
 0x5f0   : > { %v724_v4 = vmul.f32 %v723_v12, %v687_v11 }
 0x5f2   : > { %2446 = vmatpush.msk.msrb.mxu3 %vm173_vm0, %v724_v4 }
 0x5f3   : > { %2447 = vmatmul.msk.f32.vlgmr.msrb.gmra.mxu3 %vm166_vm1, %v4116_v26 }
 0x5f4   : > { %2465 = vmatpush.msk.msra.mxu3 %vm173_vm0, %v4115_v42 }
 0x5f5   : > { %1187 = vxpose.xlu1.b32.cont [6/16] (narrow) %v1105_v17, 8 }
 0x5f6   : > { %v1129_v41 = vpop.xlane.xlu1 %1128 }
 0x5fb   : > { %2466 = vmatmul.msk.f32.vlgmr.msra.gmra.mxu3 %vm166_vm1, %v1292_v48 }
 0x5fd   : > { %1188 = vxpose.xlu1.b32.cont [7/16] (narrow) %v1108_v45, 8 }
 0x5fe   : > { %v1132_v21 = vpop.xlane.xlu1 %1131 }
 0x603   : > { %2467 = vmatmul.msk.f32.gmra.mxu3 %vm166_vm1, %v1293_v32 }
 0x605   : > { %1189 = vxpose.xlu1.b32.cont [8/16] (narrow) %v1111_v63, 8 }
 0x606   : > { %v1135_v47 = vpop.xlane.xlu1 %1134 }
 0x60b   : > { %2468 = vmatmul.msk.f32.gmra.mxu3 %vm166_vm1, %v1294_v7 }
 0x60d   : > { %1190 = vxpose.xlu1.b32.cont [9/16] (narrow) %v1114_v0, 8 }
 0x613   : > { %2469 = vmatmul.msk.f32.gmra.mxu3 %vm166_vm1, %v1295_v1 }
 0x615   : > { %1191 = vxpose.xlu1.b32.cont [10/16] (narrow) %v1117_v62, 8 }
 0x61b   : > { %2470 = vmatmul.msk.f32.gmra.mxu3 %vm166_vm1, %v1296_v44 }
 0x61d   : > { %1192 = vxpose.xlu1.b32.cont [11/16] (narrow) %v1120_v36, 8 }
 0x623   : > { %2471 = vmatmul.msk.f32.gmra.mxu3 %vm166_vm1, %v1297_v19 }
 0x625   : > { %1193 = vxpose.xlu1.b32.cont [12/16] (narrow) %v1123_v10, 8 }
 0x62b   : > { %2472 = vmatmul.msk.f32.gmra.mxu3 %vm166_vm1, %v1298_v2 }
 0x62d   : > { %1194 = vxpose.xlu1.b32.cont [13/16] (narrow) %v1126_v54, 8 }
 0x633   : > { %2473 = vmatmul.msk.f32.gmra.mxu3 %vm166_vm1, %v1299_v25 }
 0x635   : > { %1195 = vxpose.xlu1.b32.cont [14/16] (narrow) %v1129_v41, 8 }
 0x63b   : > { %2474 = vmatmul.msk.f32.gmra.mxu3 %vm166_vm1, %v1300_v31 }
 0x63d   : > { %1196 = vxpose.xlu1.b32.cont [15/16] (narrow) %v1132_v21, 8 }
 0x643   : > { %2475 = vmatmul.msk.f32.gmra.mxu3 %vm166_vm1, %v1301_v43 }
 0x645   : > { %1197 = vxpose.xlu1.b32.end [16/16] (narrow) %v1135_v47, 8 }
 0x64b   : > { %2476 = vmatmul.msk.f32.gmra.mxu3 %vm166_vm1, %v1302_v5 }
 0x653   : > { %2477 = vmatmul.msk.f32.gmra.mxu3 %vm166_vm1, %v1303_v15 }
 0x65b   : > { %2478 = vmatmul.msk.f32.gmra.mxu3 %vm166_vm1, %v1304_v58 }
 0x663   : > { %2479 = vmatmul.msk.f32.gmra.mxu3 %vm166_vm1, %v1305_v13 }
 0x66b   : > { %2480 = vmatmul.msk.f32.gmra.mxu3 %vm166_vm1, %v1306_v59 }
 0x671   : > { %v1198_v60 = vpop.trf.xlu1 }
 0x672   : > { %2703 = vrcp.f32 %v1198_v60 }
 0x673   : > { %2481 = vmatmul.msk.f32.gmra.mxu3 %vm166_vm1, %v1307_v52 }
 0x676   : > { %v1267_v39 = vpop.f32.mrf.mxu3 }
 0x678   : > { %v2704_v56 = vpop.eup %2703 }
 0x679   : > { %v1215_v20 = vperm.slane %v2704_v56, 0 }
 0x67b   : > { %v1216_v55 = vmul.f32 %v1215_v20, %v1179_v37 }
 0x67d   : > { %2444 = vmatpush.msk.msrb.mxu2 %vm173_vm0, %v1216_v55 }
 0x67e   : > { %2445 = vmatmul.msk.f32.vlgmr.msrb.gmra.mxu2 %vm166_vm1, %v3478_v3  ;;  %v3514_v22 = vpop.f32.mrf.mxu3 }
 0x67f   : > { %2448 = vmatpush.msk.msra.mxu2 %vm173_vm0, %v4117_v23 }
 0x686   : > { %2449 = vmatmul.msk.f32.vlgmr.msra.gmra.mxu2 %vm166_vm1, %v1292_v48  ;;  %v3517_v8 = vpop.f32.mrf.mxu3 }
 0x68e   : > { %2450 = vmatmul.msk.f32.gmra.mxu2 %vm166_vm1, %v1293_v32  ;;  %v3520_v53 = vpop.f32.mrf.mxu3 }
 0x696   : > { %2451 = vmatmul.msk.f32.gmra.mxu2 %vm166_vm1, %v1294_v7  ;;  %v3525_v61 = vpop.f32.mrf.mxu3 }
 0x69e   : > { %2452 = vmatmul.msk.f32.gmra.mxu2 %vm166_vm1, %v1295_v1  ;;  %v3531_v16 = vpop.f32.mrf.mxu3 }
 0x6a6   : > { %2453 = vmatmul.msk.f32.gmra.mxu2 %vm166_vm1, %v1296_v44  ;;  %v3535_v38 = vpop.f32.mrf.mxu3 }
 0x6ae   : > { %2454 = vmatmul.msk.f32.gmra.mxu2 %vm166_vm1, %v1297_v19  ;;  %v3539_v50 = vpop.f32.mrf.mxu3 }
 0x6b6   : > { %2455 = vmatmul.msk.f32.gmra.mxu2 %vm166_vm1, %v1298_v2  ;;  %v3543_v30 = vpop.f32.mrf.mxu3 }
 0x6be   : > { %2456 = vmatmul.msk.f32.gmra.mxu2 %vm166_vm1, %v1299_v25  ;;  %v3549_v17 = vpop.f32.mrf.mxu3 }
 0x6c6   : > { %2457 = vmatmul.msk.f32.gmra.mxu2 %vm166_vm1, %v1300_v31  ;;  %v3553_v45 = vpop.f32.mrf.mxu3 }
 0x6ce   : > { %2458 = vmatmul.msk.f32.gmra.mxu2 %vm166_vm1, %v1301_v43  ;;  %v1468_v57 = vpop.f32.mrf.mxu3 }
 0x6d6   : > { %2459 = vmatmul.msk.f32.gmra.mxu2 %vm166_vm1, %v1302_v5  ;;  %v3559_v11 = vpop.f32.mrf.mxu3  ;;  %v4118_v5 = vld [vmem:[#allocation11_spill] sm:$0xff] }
 0x6de   : > { %2460 = vmatmul.msk.f32.gmra.mxu2 %vm166_vm1, %v1303_v15  ;;  %v1474_v63 = vpop.f32.mrf.mxu3  ;;  %v1756_v15 = vrot.slane %v4118_v5, 4 }
 0x6e6   : > { %2461 = vmatmul.msk.f32.gmra.mxu2 %vm166_vm1, %v1304_v58  ;;  %v3563_v62 = vpop.f32.mrf.mxu3 }
 0x6ee   : > { %2462 = vmatmul.msk.f32.gmra.mxu2 %vm166_vm1, %v1305_v13  ;;  %v1480_v54 = vpop.f32.mrf.mxu3 }
 0x6f6   : > { %2463 = vmatmul.msk.f32.gmra.mxu2 %vm166_vm1, %v1306_v59  ;;  %v3569_v48 = vpop.f32.mrf.mxu3 }
 0x6fe   : > { %2464 = vmatmul.msk.f32.gmra.mxu2 %vm166_vm1, %v1307_v52 }
 0x701   : > { %v1242_v35 = vpop.f32.mrf.mxu2 }
 0x702   : > { %v3523_v51 = vadd.f32 %v1267_v39, %v1242_v35 }
 0x709   : > { %v3527_v34 = vpop.f32.mrf.mxu2 }
 0x70a   : > { %v1486_v43 = vmax.f32 %v3527_v34, %v3514_v22 }
 0x711   : > { %v3529_v37 = vpop.f32.mrf.mxu2 }
 0x712   : > { %v1489_v44 = vmax.f32 %v3529_v37, %v3517_v8 }
 0x719   : > { %v3533_v27 = vpop.f32.mrf.mxu2 }
 0x71a   : > { %v1492_v56 = vmax.f32 %v3533_v27, %v3520_v53 }
 0x721   : > { %v3537_v46 = vpop.f32.mrf.mxu2 }
 0x722   : > { %v1495_v19 = vmax.f32 %v3537_v46, %v3525_v61 }
 0x729   : > { %v3541_v14 = vpop.f32.mrf.mxu2 }
 0x72a   : > { %v1498_v20 = vmax.f32 %v3541_v14, %v3531_v16 }
 0x731   : > { %v3545_v6 = vpop.f32.mrf.mxu2 }
 0x732   : > { %v1501_v31 = vmax.f32 %v3545_v6, %v3535_v38 }
 0x739   : > { %v3547_v33 = vpop.f32.mrf.mxu2 }
 0x73a   : > { %v1504_v25 = vmax.f32 %v3547_v33, %v3539_v50 }
 0x741   : > { %v3551_v28 = vpop.f32.mrf.mxu2 }
 0x742   : > { %v1507_v7 = vmax.f32 %v3551_v28, %v3543_v30 }
 0x749   : > { %v3555_v40 = vpop.f32.mrf.mxu2 }
 0x74a   : > { %v1510_v21 = vmax.f32 %v3555_v40, %v3549_v17 }
 0x751   : > { %v3557_v9 = vpop.f32.mrf.mxu2 }
 0x752   : > { %v1513_v60 = vmax.f32 %v3557_v9, %v3553_v45 }
 0x759   : > { %v1403_v12 = vpop.f32.mrf.mxu2 }
 0x75a   : > { %v1516_v10 = vmax.f32 %v1403_v12, %v1468_v57 }
 0x761   : > { %v3561_v4 = vpop.f32.mrf.mxu2 }
 0x762   : > { %v1519_v2 = vmax.f32 %v3561_v4, %v3559_v11 }
 0x769   : > { %v1409_v26 = vpop.f32.mrf.mxu2 }
 0x76a   : > { %v1522_v0 = vmax.f32 %v1409_v26, %v1474_v63 }
 0x76c   : > { %1523 = vmax.xlane.f32.xlu1 %v1522_v0 }
 0x771   : > { %v3565_v36 = vpop.f32.mrf.mxu2 }
 0x772   : > { %v1525_v55 = vmax.f32 %v3565_v36, %v3563_v62 }
 0x774   : > { %1517 = vmax.xlane.f32.xlu1 %v1516_v10 }
 0x779   : > { %v1415_v41 = vpop.f32.mrf.mxu2 }
 0x77a   : > { %v1528_v47 = vmax.f32 %v1415_v41, %v1480_v54 }
 0x77c   : > { %1511 = vmax.xlane.f32.xlu1 %v1510_v21  ;;  %1529 = vmax.xlane.f32.xlu2 %v1528_v47 }
 0x781   : > { %v3571_v32 = vpop.f32.mrf.mxu2 }
 0x782   : > { %v1531_v1 = vmax.f32 %v3571_v32, %v3569_v48 }
 0x784   : > { %1508 = vmax.xlane.f32.xlu1 %v1507_v7  ;;  %1514 = vmax.xlane.f32.xlu2 %v1513_v60 }
 0x785   : > { %1532 = vmax.xlane.f32.xlu0 %v1531_v1 }
 0x78c   : > { %1493 = vmax.xlane.f32.xlu1 %v1492_v56  ;;  %1499 = vmax.xlane.f32.xlu2 %v1498_v20 }
 0x78d   : > { %1526 = vmax.xlane.f32.xlu0 %v1525_v55 }
 0x794   : > { %1490 = vmax.xlane.f32.xlu1 %v1489_v44  ;;  %1496 = vmax.xlane.f32.xlu2 %v1495_v19 }
 0x795   : > { %1520 = vmax.xlane.f32.xlu0 %v1519_v2 }
 0x79d   : > { %1505 = vmax.xlane.f32.xlu0 %v1504_v25 }
 0x7a5   : > { %1502 = vmax.xlane.f32.xlu0 %v1501_v31 }
 0x7ad   : > { %1487 = vmax.xlane.f32.xlu0 %v1486_v43 }
 0x7bd   : > { %1758 = vxpose.xlu2.b32.start.end [1/1] (short) %v1756_v15, 128 }
 0x7df   : > { %v1524_v58 = vpop.xlane.xlu1 %1523 }
 0x7e0   : > { %v1558_v13 = vsub.f32 %v1409_v26, %v1524_v58  ;;  %v1559_v59 = vsub.f32 %v1474_v63, %v1524_v58 }
 0x7e2   : > { %v1614_v52 = vmul.f32 1.442695, %v1558_v13  ;;  %v1616_v39 = vmul.f32 1.442695, %v1559_v59 }
 0x7e4   : > { %2705 = vpow2.f32 %v1614_v52 }
 0x7e5   : > { %2707 = vpow2.f32 %v1616_v39 }
 0x7e7   : > { %v1518_v35 = vpop.xlane.xlu1 %1517 }
 0x7e8   : > { %v1554_v0 = vsub.f32 %v1403_v12, %v1518_v35  ;;  %v1555_v10 = vsub.f32 %v1468_v57, %v1518_v35 }
 0x7ea   : > { %v3598_v21 = vpop.eup %2705  ;;  %v1606_v47 = vmul.f32 1.442695, %v1554_v0  ;;  %v1608_v7 = vmul.f32 1.442695, %v1555_v10 }
 0x7eb   : > { %v3600_v60 = vpop.eup %2707 }
 0x7ec   : > { %2709 = vpow2.f32 %v1606_v47  ;;  %v3604_v1 = vadd.f32 %v3600_v60, %v3598_v21 }
 0x7ed   : > { %2711 = vpow2.f32 %v1608_v7 }
 0x7ef   : > { %v1512_v63 = vpop.xlane.xlu1 %1511  ;;  %v1530_v26 = vpop.xlane.xlu2 %1529 }
 0x7f0   : > { %v1550_v56 = vsub.f32 %v3555_v40, %v1512_v63  ;;  %v1551_v20 = vsub.f32 %v3549_v17, %v1512_v63  ;;  %v1562_v12 = vsub.f32 %v1415_v41, %v1530_v26  ;;  %v1563_v57 = vsub.f32 %v1480_v54, %v1530_v26 }
 0x7f2   : > { %v3608_v55 = vpop.eup %2709  ;;  %v1598_v44 = vmul.f32 1.442695, %v1550_v56  ;;  %v1600_v19 = vmul.f32 1.442695, %v1551_v20  ;;  %v1622_v2 = vmul.f32 1.442695, %v1562_v12 }
 0x7f3   : > { %v3610_v25 = vpop.eup %2711  ;;  %v1624_v31 = vmul.f32 1.442695, %v1563_v57 }
 0x7f4   : > { %2713 = vpow2.f32 %v1598_v44  ;;  %v3614_v43 = vadd.f32 %v3610_v25, %v3608_v55 }
 0x7f5   : > { %2715 = vpow2.f32 %v1600_v19 }
 0x7f6   : > { %2717 = vpow2.f32 %v1622_v2 }
 0x7f7   : > { %2719 = vpow2.f32 %v1624_v31  ;;  %v1509_v40 = vpop.xlane.xlu1 %1508  ;;  %v1515_v17 = vpop.xlane.xlu2 %1514 }
 0x7f8   : > { %v1548_v54 = vsub.f32 %v3551_v28, %v1509_v40  ;;  %v1549_v41 = vsub.f32 %v3543_v30, %v1509_v40  ;;  %v1533_v5 = vpop.xlane.xlu0 %1532  ;;  %v1552_v13 = vsub.f32 %v3557_v9, %v1515_v17  ;;  %v1553_v35 = vsub.f32 %v3553_v45, %v1515_v17 }
 0x7f9   : > { %v1564_v15 = vsub.f32 %v3571_v32, %v1533_v5  ;;  %v1565_v58 = vsub.f32 %v3569_v48, %v1533_v5 }
 0x7fa   : > { %v3621_v59 = vpop.eup %2713  ;;  %v1594_v52 = vmul.f32 1.442695, %v1548_v54  ;;  %v1596_v39 = vmul.f32 1.442695, %v1549_v41  ;;  %v1602_v48 = vmul.f32 1.442695, %v1552_v13 }
 0x7fb   : > { %v3624_v0 = vpop.eup %2715  ;;  %v1626_v10 = vmul.f32 1.442695, %v1564_v15  ;;  %v1628_v47 = vmul.f32 1.442695, %v1565_v58  ;;  %v1604_v9 = vmul.f32 1.442695, %v1553_v35 }
 0x7fc   : > { %v2718_v28 = vpop.eup %2717  ;;  %2721 = vpow2.f32 %v1594_v52  ;;  %v3628_v30 = vadd.f32 %v3624_v0, %v3621_v59 }
 0x7fd   : > { %v2720_v32 = vpop.eup %2719  ;;  %2723 = vpow2.f32 %v1596_v39 }
 0x7fe   : > { %2725 = vpow2.f32 %v1626_v10  ;;  %v3630_v7 = vadd.f32 %v2720_v32, %v2718_v28 }
 0x7ff   : > { %2727 = vpow2.f32 %v1628_v47  ;;  %v1494_v63 = vpop.xlane.xlu1 %1493  ;;  %v1500_v45 = vpop.xlane.xlu2 %1499 }
 0x800   : > { %v1538_v26 = vsub.f32 %v3533_v27, %v1494_v63  ;;  %v1539_v56 = vsub.f32 %v3520_v53, %v1494_v63  ;;  %v1527_v20 = vpop.xlane.xlu0 %1526  ;;  %v1542_v12 = vsub.f32 %v3541_v14, %v1500_v45  ;;  %2729 = vpow2.f32 %v1602_v48 }
 0x801   : > { %v1560_v57 = vsub.f32 %v3565_v36, %v1527_v20  ;;  %v1561_v44 = vsub.f32 %v3563_v62, %v1527_v20  ;;  %v1543_v19 = vsub.f32 %v3531_v16, %v1500_v45  ;;  %2731 = vpow2.f32 %v1604_v9 }
 0x802   : > { %v3638_v2 = vpop.eup %2721  ;;  %v1574_v31 = vmul.f32 1.442695, %v1538_v26  ;;  %v1576_v40 = vmul.f32 1.442695, %v1539_v56  ;;  %v1582_v41 = vmul.f32 1.442695, %v1542_v12 }
 0x803   : > { %v3640_v17 = vpop.eup %2723  ;;  %v1618_v27 = vmul.f32 1.442695, %v1560_v57  ;;  %v1620_v54 = vmul.f32 1.442695, %v1561_v44  ;;  %v1584_v62 = vmul.f32 1.442695, %v1543_v19 }
 0x804   : > { %v2726_v53 = vpop.eup %2725  ;;  %2733 = vpow2.f32 %v1574_v31  ;;  %v3644_v14 = vadd.f32 %v3640_v17, %v3638_v2 }
 0x805   : > { %v2728_v36 = vpop.eup %2727  ;;  %2735 = vpow2.f32 %v1576_v40  ;;  %v1692_v16 = vpack.c.bf16 %v2726_v53, %v2718_v28 }
 0x806   : > { %2737 = vpow2.f32 %v1618_v27  ;;  %v1693_v5 = vpack.c.bf16 %v2728_v36, %v2720_v32  ;;  %v3646_v15 = vadd.f32 %v2728_v36, %v2726_v53  ;;  %v3648_v58 = vpop.eup %2729 }
 0x807   : > { %2739 = vpow2.f32 %v1620_v54  ;;  %1694 = vmatpush.bf16.xpose.msra.mxu0 %v1692_v16  ;;  %v1491_v13 = vpop.xlane.xlu1 %1490  ;;  %v1497_v52 = vpop.xlane.xlu2 %1496 }
 0x808   : > { %v3650_v39 = vpop.eup %2731  ;;  %2741 = vpow2.f32 %v1582_v41  ;;  %1707 = vmatpush.bf16.xpose.msra.mxu1 %v1693_v5  ;;  %v1536_v35 = vsub.f32 %v3529_v37, %v1491_v13  ;;  %v1537_v10 = vsub.f32 %v3517_v8, %v1491_v13  ;;  %v1521_v47 = vpop.xlane.xlu0 %1520  ;;  %v1540_v28 = vsub.f32 %v3537_v46, %v1497_v52 }
 0x809   : > { %2743 = vpow2.f32 %v1584_v62  ;;  %v1556_v32 = vsub.f32 %v3561_v4, %v1521_v47  ;;  %v1557_v48 = vsub.f32 %v3559_v11, %v1521_v47  ;;  %v1541_v9 = vsub.f32 %v3525_v61, %v1497_v52 }
 0x80a   : > { %v3658_v63 = vpop.eup %2733  ;;  %v1570_v45 = vmul.f32 1.442695, %v1536_v35  ;;  %v1572_v26 = vmul.f32 1.442695, %v1537_v10  ;;  %v3664_v8 = vadd.f32 %v3650_v39, %v3648_v58  ;;  %v1578_v12 = vmul.f32 1.442695, %v1540_v28 }
 0x80b   : > { %v3660_v56 = vpop.eup %2735  ;;  %v1610_v20 = vmul.f32 1.442695, %v1556_v32  ;;  %v1612_v37 = vmul.f32 1.442695, %v1557_v48  ;;  %v1580_v4 = vmul.f32 1.442695, %v1541_v9 }
 0x80c   : > { %v2738_v46 = vpop.eup %2737  ;;  %2745 = vpow2.f32 %v1570_v45  ;;  %v3668_v11 = vadd.f32 %v3660_v56, %v3658_v63 }
 0x80d   : > { %v2740_v61 = vpop.eup %2739  ;;  %2747 = vpow2.f32 %v1572_v26  ;;  %v1690_v57 = vpack.c.bf16 %v2738_v46, %v3598_v21 }
 0x80e   : > { %v3671_v44 = vpop.eup %2741  ;;  %2749 = vpow2.f32 %v1610_v20  ;;  %v1691_v19 = vpack.c.bf16 %v2740_v61, %v3600_v60  ;;  %v3674_v31 = vadd.f32 %v2740_v61, %v2738_v46 }
 0x80f   : > { %v2744_v40 = vpop.eup %2743  ;;  %2751 = vpow2.f32 %v1612_v37  ;;  %1695 = vmatpush.bf16.xpose.msra.mxu0 %v1690_v57  ;;  %v1687_v37 = vpack.c.bf16 %v3650_v39, %v3624_v0 }
 0x810   : > { %2753 = vpow2.f32 %v1578_v12  ;;  %1708 = vmatpush.bf16.xpose.msra.mxu1 %v1691_v19  ;;  %v1506_v27 = vpop.xlane.xlu0 %1505  ;;  %v3677_v54 = vadd.f32 %v2744_v40, %v3671_v44 }
 0x811   : > { %2755 = vpow2.f32 %v1580_v4  ;;  %v1546_v53 = vsub.f32 %v3547_v33, %v1506_v27  ;;  %v1547_v21 = vsub.f32 %v3539_v50, %v1506_v27 }
 0x812   : > { %v2746_v41 = vpop.eup %2745 }
 0x813   : > { %v2748_v36 = vpop.eup %2747  ;;  %v1590_v62 = vmul.f32 1.442695, %v1546_v53  ;;  %v1592_v60 = vmul.f32 1.442695, %v1547_v21 }
 0x814   : > { %v2750_v16 = vpop.eup %2749  ;;  %v3681_v5 = vadd.f32 %v2748_v36, %v2746_v41 }
 0x815   : > { %v2752_v13 = vpop.eup %2751  ;;  %2757 = vpow2.f32 %v1590_v62  ;;  %v1688_v52 = vpack.c.bf16 %v2750_v16, %v3608_v55 }
 0x816   : > { %v2754_v35 = vpop.eup %2753  ;;  %2759 = vpow2.f32 %v1592_v60  ;;  %v1689_v10 = vpack.c.bf16 %v2752_v13, %v3610_v25  ;;  %v3685_v47 = vadd.f32 %v2752_v13, %v2750_v16  ;;  %v1686_v25 = vpack.c.bf16 %v3648_v58, %v3621_v59 }
 0x817   : > { %v2756_v33 = vpop.eup %2755  ;;  %1696 = vmatpush.bf16.xpose.msra.mxu0 %v1688_v52  ;;  %v1680_v53 = vpack.c.bf16 %v2754_v35, %v3658_v63 }
 0x818   : > { %1709 = vmatpush.bf16.xpose.msra.mxu1 %v1689_v10  ;;  %v1503_v50 = vpop.xlane.xlu0 %1502  ;;  %v3687_v28 = vadd.f32 %v2756_v33, %v2754_v35 }
 0x819   : > { %v1544_v32 = vsub.f32 %v3545_v6, %v1503_v50  ;;  %v1545_v48 = vsub.f32 %v3535_v38, %v1503_v50 }
 0x81b   : > { %v2758_v9 = vpop.eup %2757  ;;  %v1586_v45 = vmul.f32 1.442695, %v1544_v32  ;;  %v1588_v26 = vmul.f32 1.442695, %v1545_v48 }
 0x81c   : > { %v2760_v55 = vpop.eup %2759  ;;  %v1684_v59 = vpack.c.bf16 %v3638_v2, %v2758_v9  ;;  %v1681_v2 = vpack.c.bf16 %v2756_v33, %v3660_v56 }
 0x81d   : > { %2761 = vpow2.f32 %v1586_v45  ;;  %v3693_v20 = vadd.f32 %v2760_v55, %v2758_v9  ;;  %v1685_v19 = vpack.c.bf16 %v3640_v17, %v2760_v55  ;;  %v4119_v17 = vrot.slane %v4117_v23, 4 }
 0x81e   : > { %2763 = vpow2.f32 %v1588_v26 }
 0x81f   : > { %1697 = vmatpush.bf16.xpose.msra.mxu0 %v1686_v25 }
 0x820   : > { %1710 = vmatpush.bf16.xpose.msra.mxu1 %v1687_v37  ;;  %v1488_v46 = vpop.xlane.xlu0 %1487 }
 0x821   : > { %v1534_v6 = vsub.f32 %v3527_v34, %v1488_v46  ;;  %v1535_v38 = vsub.f32 %v3514_v22, %v1488_v46 }
 0x823   : > { %v2762_v12 = vpop.eup %2761  ;;  %v1566_v61 = vmul.f32 1.442695, %v1534_v6  ;;  %v1568_v4 = vmul.f32 1.442695, %v1535_v38 }
 0x824   : > { %v2764_v57 = vpop.eup %2763  ;;  %v1682_v34 = vpack.c.bf16 %v2762_v12, %v3671_v44  ;;  %v4120_v44 = vrot.slane %v4115_v42, 4 }
 0x825   : > { %2765 = vpow2.f32 %v1566_v61  ;;  %v3700_v58 = vadd.f32 %v2764_v57, %v2762_v12  ;;  %v1683_v22 = vpack.c.bf16 %v2764_v57, %v2744_v40 }
 0x826   : > { %2767 = vpow2.f32 %v1568_v4 }
 0x827   : > { %1698 = vmatpush.bf16.xpose.msra.mxu0 %v1684_v59  ;;  %v4100_v59 = vmov 8  }
 0x828   : > { %1711 = vmatpush.bf16.xpose.msra.mxu1 %v1685_v19  ;;  %2571 = vset.pattern.permute.xlu2 %v4100_v59 }
 0x82b   : > { %v2766_v0 = vpop.eup %2765 }
 0x82c   : > { %v2768_v39 = vpop.eup %2767  ;;  %v1678_v21 = vpack.c.bf16 %v2746_v41, %v2766_v0 }
 0x82d   : > { %v3704_v27 = vadd.f32 %v2768_v39, %v2766_v0  ;;  %v1679_v62 = vpack.c.bf16 %v2748_v36, %v2768_v39 }
 0x82f   : > { %1699 = vmatpush.bf16.xpose.msra.mxu0 %v1682_v34 }
 0x830   : > { %1712 = vmatpush.bf16.xpose.msra.mxu1 %v1683_v22 }
 0x837   : > { %1700 = vmatpush.bf16.xpose.msra.mxu0 %v1680_v53 }
 0x838   : > { %1713 = vmatpush.bf16.xpose.msra.mxu1 %v1681_v2 }
 0x83f   : > { %1701 = vmatpush.bf16.xpose.msra.mxu0 %v1678_v21 }
 0x840   : > { %1714 = vmatpush.bf16.xpose.msra.mxu1 %v1679_v62 }
 0x846   : > { %1702 = vmatmul.bf16.vlgmr.msra.gmra.mxu0 %v3250_v29 }
 0x847   : > { %2482 = vmatpush.msk.msrb.mxu0 %vm173_vm0, %v4119_v17  ;;  %1715 = vmatmul.bf16.vlgmr.msra.gmra.mxu1 %v4112_v49 }
 0x848   : > { %2499 = vmatpush.msk.msrb.mxu1 %vm173_vm0, %v4120_v44 }
 0x856   : > { %v1774_v63 = vpop.trf.xlu2 }
 0x857   : > { %2483 = vmatmul.msk.f32.vlgmr.msrb.gmra.mxu0 %vm166_vm1, %v1774_v63  ;;  %2500 = vmatmul.msk.f32.vlgmr.msrb.gmra.mxu1 %vm166_vm1, %v1774_v63 }
 0x85e   : > { %v1775_v56 = vpop.trf.xlu2 }
 0x85f   : > { %2484 = vmatmul.msk.f32.gmra.mxu0 %vm166_vm1, %v1775_v56  ;;  %2501 = vmatmul.msk.f32.gmra.mxu1 %vm166_vm1, %v1775_v56 }
 0x866   : > { %v1776_v23 = vpop.trf.xlu2 }
 0x867   : > { %2485 = vmatmul.msk.f32.gmra.mxu0 %vm166_vm1, %v1776_v23  ;;  %2502 = vmatmul.msk.f32.gmra.mxu1 %vm166_vm1, %v1776_v23 }
 0x86e   : > { %v1777_v42 = vpop.trf.xlu2 }
 0x86f   : > { %2486 = vmatmul.msk.f32.gmra.mxu0 %vm166_vm1, %v1777_v42  ;;  %2503 = vmatmul.msk.f32.gmra.mxu1 %vm166_vm1, %v1777_v42 }
 0x876   : > { %v1778_v40 = vpop.trf.xlu2 }
 0x877   : > { %2487 = vmatmul.msk.f32.gmra.mxu0 %vm166_vm1, %v1778_v40  ;;  %2504 = vmatmul.msk.f32.gmra.mxu1 %vm166_vm1, %v1778_v40 }
 0x87e   : > { %v1779_v41 = vpop.trf.xlu2 }
 0x87f   : > { %2488 = vmatmul.msk.f32.gmra.mxu0 %vm166_vm1, %v1779_v41  ;;  %2505 = vmatmul.msk.f32.gmra.mxu1 %vm166_vm1, %v1779_v41 }
 0x886   : > { %v1780_v36 = vpop.trf.xlu2 }
 0x887   : > { %2489 = vmatmul.msk.f32.gmra.mxu0 %vm166_vm1, %v1780_v36  ;;  %2506 = vmatmul.msk.f32.gmra.mxu1 %vm166_vm1, %v1780_v36 }
 0x88e   : > { %v1781_v60 = vpop.trf.xlu2 }
 0x88f   : > { %2490 = vmatmul.msk.f32.gmra.mxu0 %vm166_vm1, %v1781_v60  ;;  %2507 = vmatmul.msk.f32.gmra.mxu1 %vm166_vm1, %v1781_v60 }
 0x896   : > { %v1782_v16 = vpop.trf.xlu2 }
 0x897   : > { %2491 = vmatmul.msk.f32.gmra.mxu0 %vm166_vm1, %v1782_v16  ;;  %2508 = vmatmul.msk.f32.gmra.mxu1 %vm166_vm1, %v1782_v16 }
 0x89e   : > { %v1783_v13 = vpop.trf.xlu2 }
 0x89f   : > { %2492 = vmatmul.msk.f32.gmra.mxu0 %vm166_vm1, %v1783_v13  ;;  %2509 = vmatmul.msk.f32.gmra.mxu1 %vm166_vm1, %v1783_v13 }
 0x8a6   : > { %v1784_v52 = vpop.trf.xlu2 }
 0x8a7   : > { %2493 = vmatmul.msk.f32.gmra.mxu0 %vm166_vm1, %v1784_v52  ;;  %2510 = vmatmul.msk.f32.gmra.mxu1 %vm166_vm1, %v1784_v52 }
 0x8ae   : > { %v1785_v35 = vpop.trf.xlu2 }
 0x8af   : > { %2494 = vmatmul.msk.f32.gmra.mxu0 %vm166_vm1, %v1785_v35  ;;  %2511 = vmatmul.msk.f32.gmra.mxu1 %vm166_vm1, %v1785_v35 }
 0x8b6   : > { %v1786_v10 = vpop.trf.xlu2 }
 0x8b7   : > { %2495 = vmatmul.msk.f32.gmra.mxu0 %vm166_vm1, %v1786_v10  ;;  %2512 = vmatmul.msk.f32.gmra.mxu1 %vm166_vm1, %v1786_v10 }
 0x8be   : > { %v1787_v33 = vpop.trf.xlu2 }
 0x8bf   : > { %2496 = vmatmul.msk.f32.gmra.mxu0 %vm166_vm1, %v1787_v33  ;;  %2513 = vmatmul.msk.f32.gmra.mxu1 %vm166_vm1, %v1787_v33 }
 0x8c3   : > { %v1703_v50 = vpop.f32.mrf.mxu0 }
 0x8c4   : > { %v1716_v32 = vpop.f32.mrf.mxu1 }
 0x8c5   : > { %v3744_v48 = vadd.f32 %v1716_v32, %v1703_v50 }
 0x8c6   : > { %v1788_v9 = vpop.trf.xlu2 }
 0x8c7   : > { %2497 = vmatmul.msk.f32.gmra.mxu0 %vm166_vm1, %v1788_v9  ;;  %2514 = vmatmul.msk.f32.gmra.mxu1 %vm166_vm1, %v1788_v9 }
 0x8cb   : > { %v1705_v45 = vpop.f32.mrf.mxu0 }
 0x8cc   : > { %v1718_v26 = vpop.f32.mrf.mxu1 }
 0x8ce   : > { %v1789_v55 = vpop.trf.xlu2 }
 0x8cf   : > { %2498 = vmatmul.msk.f32.gmra.mxu0 %vm166_vm1, %v1789_v55  ;;  %2515 = vmatmul.msk.f32.gmra.mxu1 %vm166_vm1, %v1789_v55 }
 0x8d4   : > { %v3750_v25 = vpop.f32.mrf.mxu0  ;;  %v3752_v37 = vpop.f32.mrf.mxu1 }
 0x8d5   : > { %v1968_v46 = vmax.f32 %v3750_v25, %v3752_v37 }
 0x8d7   : > { %1969 = vmax.xlane.f32.xlu1 %v1968_v46 }
 0x8dc   : > { %v3756_v6 = vpop.f32.mrf.mxu0  ;;  %v3758_v38 = vpop.f32.mrf.mxu1 }
 0x8dd   : > { %v1971_v12 = vmax.f32 %v3756_v6, %v3758_v38 }
 0x8df   : > { %1631 = vadd.xlane.f32.xlu1 %v3704_v27  ;;  %1972 = vmax.xlane.f32.xlu0 %v1971_v12 }
 0x8e4   : > { %v3763_v61 = vpop.f32.mrf.mxu0  ;;  %v3765_v4 = vpop.f32.mrf.mxu1 }
 0x8e5   : > { %v1974_v57 = vmax.f32 %v3763_v61, %v3765_v4 }
 0x8e7   : > { %1634 = vadd.xlane.f32.xlu1 %v3681_v5  ;;  %1975 = vmax.xlane.f32.xlu2 %v1974_v57 }
 0x8ec   : > { %v3771_v19 = vpop.f32.mrf.mxu0  ;;  %v3773_v0 = vpop.f32.mrf.mxu1 }
 0x8ed   : > { %v1977_v39 = vmax.f32 %v3771_v19, %v3773_v0 }
 0x8ef   : > { %1637 = vadd.xlane.f32.xlu1 %v3668_v11  ;;  %1978 = vmax.xlane.f32.xlu0 %v1977_v39  ;;  %v3793_v11 = vld [vmem:[%s4088_s1 + $0x18] sm:$0xff] }
 0x8f4   : > { %v3778_v34 = vpop.f32.mrf.mxu0  ;;  %v3780_v27 = vpop.f32.mrf.mxu1 }
 0x8f5   : > { %v1980_v22 = vmax.f32 %v3778_v34, %v3780_v27 }
 0x8f7   : > { %1640 = vadd.xlane.f32.xlu1 %v3687_v28  ;;  %1981 = vmax.xlane.f32.xlu0 %v1980_v22 }
 0x8fc   : > { %v3785_v5 = vpop.f32.mrf.mxu0  ;;  %v3787_v53 = vpop.f32.mrf.mxu1 }
 0x8ff   : > { %1643 = vadd.xlane.f32.xlu1 %v3677_v54  ;;  %1271 = vperm.xlu2 %2571, %v3793_v11  }
 0x904   : > { %v3796_v2 = vpop.f32.mrf.mxu0  ;;  %v3798_v21 = vpop.f32.mrf.mxu1 }
 0x905   : > { %v1986_v28 = vmax.f32 %v3796_v2, %v3798_v21 }
 0x907   : > { %1646 = vadd.xlane.f32.xlu1 %v3700_v58  ;;  %1987 = vmax.xlane.f32.xlu0 %v1986_v28 }
 0x90c   : > { %v3803_v62 = vpop.f32.mrf.mxu0  ;;  %v3805_v54 = vpop.f32.mrf.mxu1 }
 0x90f   : > { %1649 = vadd.xlane.f32.xlu1 %v3693_v20 }
 0x914   : > { %v3808_v17 = vpop.f32.mrf.mxu0  ;;  %v3810_v44 = vpop.f32.mrf.mxu1 }
 0x915   : > { %v1992_v63 = vmax.f32 %v3808_v17, %v3810_v44 }
 0x917   : > { %1652 = vadd.xlane.f32.xlu1 %v3644_v14  ;;  %1993 = vmax.xlane.f32.xlu0 %v1992_v63  ;;  %v1983_v14 = vmax.f32 %v3785_v5, %v3787_v53 }
 0x91c   : > { %v3815_v56 = vpop.f32.mrf.mxu0  ;;  %v3817_v58 = vpop.f32.mrf.mxu1 }
 0x91f   : > { %1655 = vadd.xlane.f32.xlu1 %v3628_v30  ;;  %v1989_v30 = vmax.f32 %v3803_v62, %v3805_v54 }
 0x924   : > { %v3820_v23 = vpop.f32.mrf.mxu0  ;;  %v3822_v42 = vpop.f32.mrf.mxu1 }
 0x925   : > { %v1998_v20 = vmax.f32 %v3820_v23, %v3822_v42 }
 0x927   : > { %1658 = vadd.xlane.f32.xlu1 %v3664_v8  ;;  %1999 = vmax.xlane.f32.xlu0 %v1998_v20  ;;  %v1995_v8 = vmax.f32 %v3815_v56, %v3817_v58 }
 0x92c   : > { %v3829_v40 = vpop.f32.mrf.mxu0  ;;  %v3831_v41 = vpop.f32.mrf.mxu1 }
 0x92d   : > { %v2001_v35 = vmax.f32 %v3829_v40, %v3831_v41 }
 0x92f   : > { %1984 = vmax.xlane.f32.xlu1 %v1983_v14 }
 0x934   : > { %v3835_v36 = vpop.f32.mrf.mxu0  ;;  %v3837_v60 = vpop.f32.mrf.mxu1 }
 0x935   : > { %v2004_v16 = vmax.f32 %v3835_v36, %v3837_v60 }
 0x937   : > { %1990 = vmax.xlane.f32.xlu1 %v1989_v30  ;;  %2005 = vmax.xlane.f32.xlu0 %v2004_v16 }
 0x93c   : > { %v3843_v13 = vpop.f32.mrf.mxu0  ;;  %v3845_v52 = vpop.f32.mrf.mxu1 }
 0x93d   : > { %v2007_v9 = vmax.f32 %v3843_v13, %v3845_v52 }
 0x93f   : > { %1996 = vmax.xlane.f32.xlu1 %v1995_v8 }
 0x944   : > { %v3849_v10 = vpop.f32.mrf.mxu0  ;;  %v3851_v33 = vpop.f32.mrf.mxu1 }
 0x945   : > { %v2010_v50 = vmax.f32 %v3849_v10, %v3851_v33 }
 0x947   : > { %2002 = vmax.xlane.f32.xlu1 %v2001_v35  ;;  %2011 = vmax.xlane.f32.xlu0 %v2010_v50 }
 0x94a   : > { %v1970_v32 = vpop.xlane.xlu1 %1969 }
 0x94b   : > { %v2016_v45 = vsub.f32 %v3750_v25, %v1970_v32  ;;  %v2017_v26 = vsub.f32 %v3752_v37, %v1970_v32 }
 0x94c   : > { %v3859_v12 = vpop.f32.mrf.mxu0  ;;  %v3861_v57 = vpop.f32.mrf.mxu1 }
 0x94d   : > { %v2048_v55 = vmul.f32 1.442695, %v2016_v45  ;;  %v2050_v46 = vmul.f32 1.442695, %v2017_v26  ;;  %v2013_v25 = vmax.f32 %v3859_v12, %v3861_v57 }
 0x94f   : > { %2769 = vpow2.f32 %v2048_v55  ;;  %2008 = vmax.xlane.f32.xlu1 %v2007_v9 }
 0x950   : > { %2771 = vpow2.f32 %v2050_v46 }
 0x952   : > { %v3863_v39 = vpop.xlane.xlu1 %1631  ;;  %v1973_v22 = vpop.xlane.xlu0 %1972 }
 0x953   : > { %v2018_v28 = vsub.f32 %v3756_v6, %v1973_v22  ;;  %v2019_v63 = vsub.f32 %v3758_v38, %v1973_v22 }
 0x955   : > { %v3869_v37 = vpop.eup %2769  ;;  %v2052_v20 = vmul.f32 1.442695, %v2018_v28  ;;  %v2054_v14 = vmul.f32 1.442695, %v2019_v63 }
 0x956   : > { %v3871_v30 = vpop.eup %2771 }
 0x957   : > { %2773 = vpow2.f32 %v2052_v20  ;;  %2014 = vmax.xlane.f32.xlu1 %v2013_v25  ;;  %v2112_v16 = vadd.f32 %v3871_v30, %v3869_v37 }
 0x958   : > { %2775 = vpow2.f32 %v2054_v14 }
 0x959   : > { %2113 = vadd.xlane.f32.xlu0 %v2112_v16 }
 0x95a   : > { %v3875_v6 = vpop.xlane.xlu1 %1634  ;;  %v1976_v38 = vpop.xlane.xlu2 %1975 }
 0x95b   : > { %v2020_v8 = vsub.f32 %v3763_v61, %v1976_v38  ;;  %v2021_v35 = vsub.f32 %v3765_v4, %v1976_v38 }
 0x95d   : > { %v3879_v50 = vpop.eup %2773  ;;  %v2056_v32 = vmul.f32 1.442695, %v2020_v8  ;;  %v2058_v9 = vmul.f32 1.442695, %v2021_v35 }
 0x95e   : > { %v3882_v45 = vpop.eup %2775 }
 0x95f   : > { %2777 = vpow2.f32 %v2056_v32  ;;  %1661 = vadd.xlane.f32.xlu1 %v3614_v43  ;;  %v2115_v55 = vadd.f32 %v3882_v45, %v3879_v50 }
 0x960   : > { %2779 = vpow2.f32 %v2058_v9 }
 0x961   : > { %2116 = vadd.xlane.f32.xlu0 %v2115_v55 }
 0x962   : > { %v3893_v4 = vpop.xlane.xlu1 %1637  ;;  %v1979_v46 = vpop.xlane.xlu0 %1978 }
 0x963   : > { %v2022_v22 = vsub.f32 %v3771_v19, %v1979_v46  ;;  %v2023_v28 = vsub.f32 %v3773_v0, %v1979_v46  ;;  %v3897_v63 = vpop.permute.xlu2 %1271 }
 0x964   : > { %v1274_v43 = vadd.f32 %v3897_v63, %v3523_v51 }
 0x965   : > { %v3901_v25 = vpop.eup %2777  ;;  %v2060_v20 = vmul.f32 1.442695, %v2022_v22  ;;  %v2062_v14 = vmul.f32 1.442695, %v2023_v28 }
 0x966   : > { %v3903_v16 = vpop.eup %2779  ;;  %1275 = vst [vmem:[%s3905_s17] sm:$0xff] %v1274_v43 }
 0x967   : > { %2781 = vpow2.f32 %v2060_v20  ;;  %1664 = vadd.xlane.f32.xlu1 %v3685_v47  ;;  %v2118_v19 = vadd.f32 %v3903_v16, %v3901_v25 }
 0x968   : > { %2783 = vpow2.f32 %v2062_v14 }
 0x969   : > { %2119 = vadd.xlane.f32.xlu0 %v2118_v19 }
 0x96a   : > { %v3911_v0 = vpop.xlane.xlu1 %1640  ;;  %v1982_v51 = vpop.xlane.xlu0 %1981 }
 0x96b   : > { %v2024_v38 = vsub.f32 %v3778_v34, %v1982_v51  ;;  %v2025_v8 = vsub.f32 %v3780_v27, %v1982_v51 }
 0x96d   : > { %v3915_v35 = vpop.eup %2781  ;;  %v2064_v32 = vmul.f32 1.442695, %v2024_v38  ;;  %v2066_v9 = vmul.f32 1.442695, %v2025_v8 }
 0x96e   : > { %v3917_v55 = vpop.eup %2783 }
 0x96f   : > { %2785 = vpow2.f32 %v2064_v32  ;;  %1667 = vadd.xlane.f32.xlu1 %v3604_v1  ;;  %v2121_v46 = vadd.f32 %v3917_v55, %v3915_v35 }
 0x970   : > { %2787 = vpow2.f32 %v2066_v9 }
 0x971   : > { %2122 = vadd.xlane.f32.xlu0 %v2121_v46 }
 0x972   : > { %v3926_v27 = vpop.xlane.xlu1 %1643 }
 0x975   : > { %v3928_v22 = vpop.eup %2785 }
 0x976   : > { %v3930_v28 = vpop.eup %2787 }
 0x977   : > { %1670 = vadd.xlane.f32.xlu1 %v3674_v31  ;;  %v2124_v43 = vadd.f32 %v3930_v28, %v3928_v22 }
 0x979   : > { %2125 = vadd.xlane.f32.xlu0 %v2124_v43 }
 0x97a   : > { %v3935_v1 = vpop.xlane.xlu1 %1646  ;;  %v1988_v38 = vpop.xlane.xlu0 %1987 }
 0x97b   : > { %v2028_v9 = vsub.f32 %v3796_v2, %v1988_v38  ;;  %v2029_v43 = vsub.f32 %v3798_v21, %v1988_v38 }
 0x97d   : > { %v2074_v59 = vmul.f32 1.442695, %v2029_v43 }
 0x97f   : > { %1673 = vadd.xlane.f32.xlu1 %v3630_v7 }
 0x982   : > { %v3938_v20 = vpop.xlane.xlu1 %1649 }
 0x987   : > { %1676 = vadd.xlane.f32.xlu1 %v3646_v15  ;;  %v2072_v15 = vmul.f32 1.442695, %v2028_v9 }
 0x98a   : > { %v3941_v14 = vpop.xlane.xlu1 %1652  ;;  %v1994_v18 = vpop.xlane.xlu0 %1993 }
 0x992   : > { %v3943_v19 = vpop.xlane.xlu1 %1655 }
 0x99a   : > { %v3945_v51 = vpop.xlane.xlu1 %1658 }
 0x9a2   : > { %v1985_v31 = vpop.xlane.xlu1 %1984 }
 0x9a3   : > { %v2026_v8 = vsub.f32 %v3785_v5, %v1985_v31  ;;  %v2027_v32 = vsub.f32 %v3787_v53, %v1985_v31 }
 0x9a5   : > { %v2068_v46 = vmul.f32 1.442695, %v2026_v8  ;;  %v2070_v7 = vmul.f32 1.442695, %v2027_v32  ;;  %v2000_v8 = vpop.xlane.xlu0 %1999 }
 0x9a7   : > { %2789 = vpow2.f32 %v2068_v46 }
 0x9a8   : > { %2791 = vpow2.f32 %v2070_v7 }
 0x9a9   : > { %2793 = vpow2.f32 %v2072_v15 }
 0x9aa   : > { %v1991_v24 = vpop.xlane.xlu1 %1990  ;;  %2795 = vpow2.f32 %v2074_v59  ;;  %v2033_v59 = vsub.f32 %v3810_v44, %v1994_v18 }
 0x9ab   : > { %v2030_v26 = vsub.f32 %v3803_v62, %v1991_v24  ;;  %v2031_v53 = vsub.f32 %v3805_v54, %v1991_v24  ;;  %v2032_v24 = vsub.f32 %v3808_v17, %v1994_v18 }
 0x9ad   : > { %v3951_v61 = vpop.eup %2789  ;;  %v2076_v31 = vmul.f32 1.442695, %v2030_v26  ;;  %v2078_v32 = vmul.f32 1.442695, %v2031_v53  ;;  %v2080_v7 = vmul.f32 1.442695, %v2032_v24  ;;  %v2006_v43 = vpop.xlane.xlu0 %2005 }
 0x9ae   : > { %v3954_v5 = vpop.eup %2791  ;;  %v2164_v2 = vpack.c.bf16 %v3951_v61, %v3928_v22  ;;  %v2082_v26 = vmul.f32 1.442695, %v2033_v59  ;;  %v4123_v22 = vpack.c.bf16 %v3879_v50, %v3869_v37 }
 0x9af   : > { %v2127_v21 = vadd.f32 %v3954_v5, %v3951_v61  ;;  %v2165_v38 = vpack.c.bf16 %v3954_v5, %v3930_v28  ;;  %v3963_v62 = vpop.eup %2793  ;;  %2797 = vpow2.f32 %v2076_v31 }
 0x9b0   : > { %v3965_v46 = vpop.eup %2795  ;;  %2799 = vpow2.f32 %v2078_v32 }
 0x9b1   : > { %2128 = vadd.xlane.f32.xlu0 %v2127_v21  ;;  %v2130_v54 = vadd.f32 %v3965_v46, %v3963_v62  ;;  %2801 = vpow2.f32 %v2080_v7 }
 0x9b2   : > { %v1997_v9 = vpop.xlane.xlu1 %1996  ;;  %2803 = vpow2.f32 %v2082_v26 }
 0x9b3   : > { %v2034_v34 = vsub.f32 %v3815_v56, %v1997_v9  ;;  %v2035_v17 = vsub.f32 %v3817_v58, %v1997_v9  ;;  %v2037_v56 = vsub.f32 %v3822_v42, %v2000_v8 }
 0x9b5   : > { %v3971_v53 = vpop.eup %2797  ;;  %v2084_v44 = vmul.f32 1.442695, %v2034_v34  ;;  %v2086_v31 = vmul.f32 1.442695, %v2035_v17  ;;  %v2090_v26 = vmul.f32 1.442695, %v2037_v56  ;;  %v2040_v56 = vsub.f32 %v3835_v36, %v2006_v43 }
 0x9b6   : > { %v3973_v21 = vpop.eup %2799 }
 0x9b7   : > { %v2133_v18 = vadd.f32 %v3973_v21, %v3971_v53  ;;  %v3980_v59 = vpop.eup %2801  ;;  %2805 = vpow2.f32 %v2084_v44 }
 0x9b8   : > { %v3983_v7 = vpop.eup %2803  ;;  %2807 = vpow2.f32 %v2086_v31 }
 0x9b9   : > { %2131 = vadd.xlane.f32.xlu0 %v2130_v54  ;;  %v2036_v54 = vsub.f32 %v3820_v23, %v2000_v8 }
 0x9ba   : > { %v2003_v15 = vpop.xlane.xlu1 %2002  ;;  %v2012_v32 = vpop.xlane.xlu0 %2011 }
 0x9bb   : > { %v2044_v58 = vsub.f32 %v3849_v10, %v2012_v32  ;;  %v2045_v34 = vsub.f32 %v3851_v33, %v2012_v32  ;;  %v2088_v9 = vmul.f32 1.442695, %v2036_v54  ;;  %v2038_v42 = vsub.f32 %v3829_v40, %v2003_v15 }
 0x9bc   : > { %v2039_v44 = vsub.f32 %v3831_v41, %v2003_v15 }
 0x9bd   : > { %v2104_v17 = vmul.f32 1.442695, %v2044_v58  ;;  %v2106_v23 = vmul.f32 1.442695, %v2045_v34  ;;  %v3991_v47 = vpop.eup %2805  ;;  %2809 = vpow2.f32 %v2088_v9  ;;  %v2092_v40 = vmul.f32 1.442695, %v2038_v42 }
 0x9be   : > { %v3996_v8 = vpop.eup %2807  ;;  %2811 = vpow2.f32 %v2090_v26  ;;  %v2094_v58 = vmul.f32 1.442695, %v2039_v44 }
 0x9bf   : > { %2813 = vpow2.f32 %v2104_v17 }
 0x9c0   : > { %2815 = vpow2.f32 %v2106_v23 }
 0x9c1   : > { %2134 = vadd.xlane.f32.xlu0 %v2133_v18  ;;  %1720 = vxpose.xlu1.b32.start [1/16] (narrow) %v3863_v39, 8  ;;  %v2136_v39 = vadd.f32 %v3983_v7, %v3980_v59 }
 0x9c2   : > { %v2009_v24 = vpop.xlane.xlu1 %2008 }
 0x9c3   : > { %v2042_v31 = vsub.f32 %v3843_v13, %v2009_v24  ;;  %v2043_v54 = vsub.f32 %v3845_v52, %v2009_v24  ;;  %v2810_v41 = vpop.eup %2809  ;;  %v2096_v52 = vmul.f32 1.442695, %v2040_v56 }
 0x9c4   : > { %v2812_v13 = vpop.eup %2811 }
 0x9c5   : > { %v2100_v15 = vmul.f32 1.442695, %v2042_v31  ;;  %v2102_v34 = vmul.f32 1.442695, %v2043_v54  ;;  %v2814_v9 = vpop.eup %2813  ;;  %v2142_v17 = vadd.f32 %v2812_v13, %v2810_v41 }
 0x9c6   : > { %v2816_v36 = vpop.eup %2815 }
 0x9c9   : > { %2137 = vadd.xlane.f32.xlu0 %v2136_v39  ;;  %1721 = vxpose.xlu1.b32.cont [2/16] (narrow) %v3875_v6, 8 }
 0x9ca   : > { %v2015_v18 = vpop.xlane.xlu1 %2014 }
 0x9cb   : > { %v2046_v10 = vsub.f32 %v3859_v12, %v2015_v18  ;;  %v2047_v33 = vsub.f32 %v3861_v57, %v2015_v18  ;;  %v2139_v12 = vadd.f32 %v3996_v8, %v3991_v47  ;;  %v2041_v57 = vsub.f32 %v3837_v60, %v2006_v43 }
 0x9cc   : > { %v2114_v61 = vpop.xlane.xlu0 %2113 }
 0x9cd   : > { %v2108_v6 = vmul.f32 1.442695, %v2046_v10  ;;  %v2110_v32 = vmul.f32 1.442695, %v2047_v33  ;;  %v2098_v24 = vmul.f32 1.442695, %v2041_v57  ;;  %v2167_v57 = vpack.c.bf16 %v3973_v21, %v3965_v46 }
 0x9cf   : > { %2817 = vpow2.f32 %v2108_v6 }
 0x9d0   : > { %2819 = vpow2.f32 %v2110_v32 }
 0x9d1   : > { %2140 = vadd.xlane.f32.xlu0 %v2139_v12  ;;  %1722 = vxpose.xlu1.b32.cont [3/16] (narrow) %v3893_v4, 8  ;;  %2821 = vpow2.f32 %v2092_v40  ;;  %v2169_v40 = vpack.c.bf16 %v3996_v8, %v3983_v7 }
 0x9d2   : > { %2823 = vpow2.f32 %v2094_v58  ;;  %v2154_v58 = vadd.f32 %v2816_v36, %v2814_v9 }
 0x9d3   : > { %2825 = vpow2.f32 %v2100_v15 }
 0x9d4   : > { %2827 = vpow2.f32 %v2102_v34  ;;  %v2117_v5 = vpop.xlane.xlu0 %2116 }
 0x9d5   : > { %v2818_v39 = vpop.eup %2817  ;;  %2829 = vpow2.f32 %v2096_v52 }
 0x9d6   : > { %v2820_v26 = vpop.eup %2819  ;;  %v2174_v60 = vpack.c.bf16 %v2818_v39, %v2814_v9  ;;  %2831 = vpow2.f32 %v2098_v24 }
 0x9d7   : > { %v2175_v43 = vpack.c.bf16 %v2820_v26, %v2816_v36  ;;  %v2822_v23 = vpop.eup %2821 }
 0x9d8   : > { %2176 = vmatpush.bf16.xpose.msrb.mxu2 %v2174_v60  ;;  %v2824_v4 = vpop.eup %2823  ;;  %v2170_v32 = vpack.c.bf16 %v2822_v23, %v2810_v41 }
 0x9d9   : > { %2189 = vmatpush.bf16.xpose.msrb.mxu3 %v2175_v43  ;;  %2143 = vadd.xlane.f32.xlu0 %v2142_v17  ;;  %v2826_v18 = vpop.eup %2825  ;;  %v2145_v6 = vadd.f32 %v2824_v4, %v2822_v23  ;;  %v2171_v54 = vpack.c.bf16 %v2824_v4, %v2812_v13  ;;  %v4127_v43 = vmov 8  }
 0x9da   : > { %1723 = vxpose.xlu1.b32.cont [4/16] (narrow) %v3911_v0, 8  ;;  %v2828_v42 = vpop.eup %2827  ;;  %v2168_v0 = vpack.c.bf16 %v3991_v47, %v3980_v59  ;;  %v2157_v47 = vadd.f32 %v2820_v26, %v2818_v39 }
 0x9db   : > { %v2830_v10 = vpop.eup %2829  ;;  %v2151_v12 = vadd.f32 %v2828_v42, %v2826_v18 }
 0x9dc   : > { %v2832_v33 = vpop.eup %2831  ;;  %v2172_v44 = vpack.c.bf16 %v2826_v18, %v2830_v10 }
 0x9dd   : > { %v2173_v31 = vpack.c.bf16 %v2828_v42, %v2832_v33  ;;  %v2148_v56 = vadd.f32 %v2832_v33, %v2830_v10 }
 0x9e0   : > { %2177 = vmatpush.bf16.xpose.msrb.mxu2 %v2172_v44 }
 0x9e1   : > { %2190 = vmatpush.bf16.xpose.msrb.mxu3 %v2173_v31  ;;  %2146 = vadd.xlane.f32.xlu0 %v2145_v6 }
 0x9e2   : > { %1724 = vxpose.xlu1.b32.cont [5/16] (narrow) %v3926_v27, 8  ;;  %v2166_v27 = vpack.c.bf16 %v3971_v53, %v3963_v62 }
 0x9e8   : > { %2178 = vmatpush.bf16.xpose.msrb.mxu2 %v2170_v32 }
 0x9e9   : > { %2191 = vmatpush.bf16.xpose.msrb.mxu3 %v2171_v54  ;;  %2149 = vadd.xlane.f32.xlu0 %v2148_v56 }
 0x9ea   : > { %1725 = vxpose.xlu1.b32.cont [6/16] (narrow) %v3935_v1, 8  ;;  %v1662_v1 = vpop.xlane.xlu1 %1661 }
 0x9f0   : > { %2179 = vmatpush.bf16.xpose.msrb.mxu2 %v2168_v0 }
 0x9f1   : > { %2192 = vmatpush.bf16.xpose.msrb.mxu3 %v2169_v40  ;;  %2152 = vadd.xlane.f32.xlu0 %v2151_v12 }
 0x9f2   : > { %1726 = vxpose.xlu1.b32.cont [7/16] (narrow) %v3938_v20, 8  ;;  %v4121_v20 = vpack.c.bf16 %v3915_v35, %v3901_v25  ;;  %v1665_v28 = vpop.xlane.xlu1 %1664  ;;  %v4125_v25 = vrot.slane %v3250_v29, 2 }
 0x9f8   : > { %2180 = vmatpush.bf16.xpose.msrb.mxu2 %v2166_v27 }
 0x9f9   : > { %2193 = vmatpush.bf16.xpose.msrb.mxu3 %v2167_v57  ;;  %2155 = vadd.xlane.f32.xlu0 %v2154_v58 }
 0x9fa   : > { %1727 = vxpose.xlu1.b32.cont [8/16] (narrow) %v3941_v14, 8  ;;  %v4122_v14 = vpack.c.bf16 %v3917_v55, %v3903_v16  ;;  %v4126_v16 = vrot.slane %v4112_v49, 2  ;;  %v1668_v35 = vpop.xlane.xlu1 %1667  ;;  %v2120_v55 = vpop.xlane.xlu0 %2119 }
 0xa00   : > { %2181 = vmatpush.bf16.xpose.msrb.mxu2 %v2164_v2 }
 0xa01   : > { %2194 = vmatpush.bf16.xpose.msrb.mxu3 %v2165_v38  ;;  %2158 = vadd.xlane.f32.xlu0 %v2157_v47 }
 0xa02   : > { %1728 = vxpose.xlu1.b32.cont [9/16] (narrow) %v3943_v19, 8  ;;  %v4124_v19 = vpack.c.bf16 %v3882_v45, %v3871_v30  ;;  %v2123_v37 = vpop.xlane.xlu0 %2122 }
 0xa08   : > { %2182 = vmatpush.bf16.xpose.msrb.mxu2 %v4121_v20 }
 0xa09   : > { %2195 = vmatpush.bf16.xpose.msrb.mxu3 %v4122_v14 }
 0xa0a   : > { %1729 = vxpose.xlu1.b32.cont [10/16] (narrow) %v3945_v51, 8  ;;  %v1671_v51 = vpop.xlane.xlu1 %1670  ;;  %v2126_v30 = vpop.xlane.xlu0 %2125 }
 0xa10   : > { %2183 = vmatpush.bf16.xpose.msrb.mxu2 %v4123_v22 }
 0xa11   : > { %2196 = vmatpush.bf16.xpose.msrb.mxu3 %v4124_v19 }
 0xa12   : > { %1730 = vxpose.xlu1.b32.cont [11/16] (narrow) %v1662_v1, 8  ;;  %v1674_v50 = vpop.xlane.xlu1 %1673 }
 0xa17   : > { %2184 = vmatmul.bf16.vlgmr.msrb.gmra.mxu2 %v4125_v25 }
 0xa18   : > { %2197 = vmatmul.bf16.vlgmr.msrb.gmra.mxu3 %v4126_v16 }
 0xa1a   : > { %1731 = vxpose.xlu1.b32.cont [12/16] (narrow) %v1665_v28, 8  ;;  %v1677_v45 = vpop.xlane.xlu1 %1676 }
 0xa22   : > { %1732 = vxpose.xlu1.b32.cont [13/16] (narrow) %v1668_v35, 8 }
 0xa24   : > { %v2129_v29 = vpop.xlane.xlu0 %2128 }
 0xa2a   : > { %1733 = vxpose.xlu1.b32.cont [14/16] (narrow) %v1671_v51, 8  ;;  %2202 = vxpose.xlu0.b32.start [1/16] (narrow) %v2114_v61, 8 }
 0xa2c   : > { %v2132_v2 = vpop.xlane.xlu0 %2131 }
 0xa32   : > { %1734 = vxpose.xlu1.b32.cont [15/16] (narrow) %v1674_v50, 8  ;;  %2203 = vxpose.xlu0.b32.cont [2/16] (narrow) %v2117_v5, 8 }
 0xa34   : > { %v2135_v49 = vpop.xlane.xlu0 %2134 }
 0xa3a   : > { %1735 = vxpose.xlu1.b32.end [16/16] (narrow) %v1677_v45, 8  ;;  %2204 = vxpose.xlu0.b32.cont [3/16] (narrow) %v2120_v55, 8 }
 0xa3c   : > { %v2138_v38 = vpop.xlane.xlu0 %2137 }
 0xa42   : > { %2205 = vxpose.xlu0.b32.cont [4/16] (narrow) %v2123_v37, 8 }
 0xa44   : > { %v2141_v62 = vpop.xlane.xlu0 %2140 }
 0xa4a   : > { %2206 = vxpose.xlu0.b32.cont [5/16] (narrow) %v2126_v30, 8 }
 0xa4c   : > { %v2144_v59 = vpop.xlane.xlu0 %2143 }
 0xa52   : > { %2207 = vxpose.xlu0.b32.cont [6/16] (narrow) %v2129_v29, 8 }
 0xa54   : > { %v2147_v8 = vpop.xlane.xlu0 %2146 }
 0xa5a   : > { %2208 = vxpose.xlu0.b32.cont [7/16] (narrow) %v2132_v2, 8 }
 0xa5c   : > { %v2150_v41 = vpop.xlane.xlu0 %2149 }
 0xa62   : > { %2209 = vxpose.xlu0.b32.cont [8/16] (narrow) %v2135_v49, 8 }
 0xa64   : > { %v2153_v15 = vpop.xlane.xlu0 %2152 }
 0xa66   : > { %v1736_v46 = vpop.trf.xlu1 }
 0xa67   : > { %2833 = vrcp.f32 %v1736_v46 }
 0xa6a   : > { %2210 = vxpose.xlu0.b32.cont [9/16] (narrow) %v2138_v38, 8 }
 0xa6c   : > { %v2156_v13 = vpop.xlane.xlu0 %2155 }
 0xa6d   : > { %v2834_v53 = vpop.eup %2833 }
 0xa6e   : > { %v1753_v21 = vperm.slane %v2834_v53, 0 }
 0xa70   : > { %v1754_v7 = vmul.f32 %v1753_v21, %v3744_v48 }
 0xa72   : > { %2518 = vmatpush.msk.msra.mxu3 %vm173_vm0, %v1754_v7  ;;  %2211 = vxpose.xlu0.b32.cont [10/16] (narrow) %v2141_v62, 8 }
 0xa73   : > { %2519 = vmatmul.msk.f32.vlgmr.msra.gmra.mxu3 %vm166_vm1, %v3793_v11 }
 0xa74   : > { %v2159_v52 = vpop.xlane.xlu0 %2158 }
 0xa7a   : > { %2212 = vxpose.xlu0.b32.cont [11/16] (narrow) %v2144_v59, 8 }
 0xa82   : > { %2213 = vxpose.xlu0.b32.cont [12/16] (narrow) %v2147_v8, 8 }
 0xa8a   : > { %2214 = vxpose.xlu0.b32.cont [13/16] (narrow) %v2150_v41, 8 }
 0xa92   : > { %2215 = vxpose.xlu0.b32.cont [14/16] (narrow) %v2153_v15, 8 }
 0xa9a   : > { %2216 = vxpose.xlu0.b32.cont [15/16] (narrow) %v2156_v13, 8  ;;  %v2185_v34 = vpop.f32.mrf.mxu2 }
 0xa9b   : > { %v2198_v9 = vpop.f32.mrf.mxu3 }
 0xa9c   : > { %v2199_v39 = vadd.f32 %v2198_v9, %v2185_v34 }
 0xaa2   : > { %2217 = vxpose.xlu0.b32.end [16/16] (narrow) %v2159_v52, 8  ;;  %v2187_v48 = vpop.f32.mrf.mxu2 }
 0xaa3   : > { %v2200_v36 = vpop.f32.mrf.mxu3 }
 0xace   : > { %v2218_v24 = vpop.trf.xlu0 }
 0xacf   : > { %2835 = vrcp.f32 %v2218_v24 }
 0xad5   : > { %v2836_v11 = vpop.eup %2835 }
 0xad6   : > { %v2235_v26 = vperm.slane %v2836_v11, 0 }
 0xad8   : > { %v2236_v60 = vmul.f32 %v2235_v26, %v2199_v39 }
 0xada   : > { %2516 = vmatpush.msk.msra.mxu2 %vm173_vm0, %v2236_v60 }
 0xadb   : > { %2517 = vmatmul.msk.f32.vlgmr.msra.gmra.mxu2 %vm166_vm1, %v3478_v3 }
 0xaf6   : > { %v2280_v17 = vpop.f32.mrf.mxu3 }
 0xb09   : > { %2572 = vset.pattern.permute.xlu0 %v4127_v43 }
 0xb5e   : > { %v2257_v23 = vpop.f32.mrf.mxu2 }
 0xb5f   : > { %v2281_v4 = vadd.f32 %v2280_v17, %v2257_v23 }
 0xb61   : > { %v2283_v18 = vadd.f32 %v2281_v4, %v3897_v63 }
 0xb63   : > { %2284 = vst [vmem:[%s3905_s17 + $0x8] sm:$0xff] %v2283_v18 }
 0xb64   : > { %2865 = shalt.err (!%p2862_p3)
}
 0xb65   : > { %2527 = dma.vmem_to_hbm [thread:$0]  (%p2958_p5), %s2300_s25, 256, %s2302_s26, %s2286_s27  }
 0xb66 PF: > { %p2533_p4 = scmp.ge.s32.totalorder %s2900_s12, 2  ;;  %s2313_s6 = sand.u32 1, %s2888_s9  }
 0xb67   : > { %s2314_s7 = scalar_lea.sflag [#allocation3], %s2313_s6 }
 0xb68   : > { %p2530_p7 = pnand %p2533_p4, %p2962_p6 }
 0xb6a   : > { %p2531_p8 = pneg %p2530_p7 }
 0xb6c   : > { %2883 = dma.done.wait (%p2531_p8), %s2314_s7, 256  }
 0xb6d   : > { %2885 = vsyncadd (%p2531_p8), %s2314_s7, 4294967040  ;;  %p12_p9 = scmp.ge.s32.totalorder %s2945_s15, 4   ;;  %s4128_s9 = smov %s2892_s10 }
 0xb6e   : > { %s4129_s10 = smov %s2896_s11  ;;  %s4130_s11 = smov %s2956_s18 }
 0xb6f   : > { %s4131_s12 = smov %s2945_s15  ;;  %14 = sbr.rel (!%p12_p9) target bundleno = 3 (0x3), region = 63 }
 0xb74   :  { %2320 = vsyncpa [#allocation3], 1 }
 0xb75   :  { %2322 = vsyncpa [#allocation3 + $0x1], 1 }

</bundles_post_ra>
